<compile_context>
chip_gen: v7x
topology: tpu7x:2x2x1
jax: 0.10.0
libtpu: 0.0.40
codegen_flags: <defaults>
</compile_context>

<pallas_src>
import functools

import jax
import jax.numpy as jnp
import numpy as np
from jax.experimental import pallas as pl
from jax.experimental.pallas import tpu as pltpu

LRELU = 0.01
EPS = 1e-5


@functools.lru_cache(maxsize=None)
def _vmem_limit_bytes():
    # Generation-aware limit (review: hardcoded 64 MiB == all of v7x VMEM, no headroom).
    try:
        return int(pltpu.get_tpu_info().vmem_capacity_bytes * 0.7)
    except Exception:
        return 48 * 1024 * 1024


def _largest_divisor_fitting(D, bytes_per_row, budget):
    """Largest divisor of D whose per-step working set (~ bytes_per_row * TD) fits."""
    best = 1
    for td in range(1, D + 1):
        if D % td == 0 and td * bytes_per_row <= budget:
            best = td
    return best


# ---------------------------------------------------------------------------
# Kernel 1: fused MaxPool3d(kernel=2, stride=2) + Conv3d 1x1x1 (with bias)
# Tiled over (batch, output-D slabs); 1x1x1 conv == per-voxel matmul over channels.
# ---------------------------------------------------------------------------
def _pool_conv1x1_kernel(x_ref, w_ref, b_ref, o_ref):
    x = x_ref[0]                                   # (2*TDp, H, W, Cin)
    D2, H, W, Cin = x.shape
    Dp, Hp, Wp = D2 // 2, H // 2, W // 2

    # MaxPool3d k=2 s=2 (even D/H/W assumed, as in the PyTorch usage).
    # D/H splits are outer-axis reshapes (no relayout).  The W split is kept as a
    # reshape for lowering robustness.
    # TODO(synk): review item: a stride-2 sublane slice for W would avoid one relayout.
    p = jnp.max(x.reshape(Dp, 2, H, W, Cin), axis=1)
    p = jnp.max(p.reshape(Dp, Hp, 2, W, Cin), axis=2)
    p = jnp.max(p.reshape(Dp, Hp, Wp, 2, Cin), axis=3)

    flat = p.reshape(Dp * Hp * Wp, Cin).astype(jnp.bfloat16)
    y = jnp.dot(flat, w_ref[...], preferred_element_type=jnp.float32) + b_ref[...]
    o_ref[0] = y.reshape(Dp, Hp, Wp, -1).astype(o_ref.dtype)


def pool_conv1x1(x, w, b, td_out):
    N, D, H, W, Cin = x.shape
    Cout = w.shape[1]
    Do, Ho, Wo = D // 2, H // 2, W // 2
    return pl.pallas_call(
        _pool_conv1x1_kernel,
        out_shape=jax.ShapeDtypeStruct((N, Do, Ho, Wo, Cout), jnp.bfloat16),
        grid=(N, Do // td_out),
        in_specs=[
            pl.BlockSpec((1, 2 * td_out, H, W, Cin), lambda n, i: (n, i, 0, 0, 0)),
            pl.BlockSpec((Cin, Cout), lambda n, i: (0, 0)),
            pl.BlockSpec((1, Cout), lambda n, i: (0, 0)),
        ],
        out_specs=pl.BlockSpec((1, td_out, Ho, Wo, Cout), lambda n, i: (n, i, 0, 0, 0)),
        compiler_params=pltpu.CompilerParams(
            dimension_semantics=("parallel", "parallel"),
            vmem_limit_bytes=_vmem_limit_bytes()),
    )(x, w.astype(jnp.bfloat16), b)


# ---------------------------------------------------------------------------
# Kernel 2a: InstanceNorm statistics (pass 1 of the two-pass norm).
# Accumulates per-(sample, channel) sum / sumsq over D-slabs, finalizes to mean / rstd.
# ---------------------------------------------------------------------------
def _instance_stats_kernel(x_ref, s_ref, *, inv_vol):
    i = pl.program_id(1)

    @pl.when(i == 0)
    def _init():
        s_ref[...] = jnp.zeros_like(s_ref)

    x = x_ref[0].astype(jnp.float32)                 # (TD, H, W, C)
    flat = x.reshape(-1, x.shape[-1])
    s_ref[0, 0:1, :] += jnp.sum(flat, axis=0, keepdims=True)
    s_ref[0, 1:2, :] += jnp.sum(flat * flat, axis=0, keepdims=True)

    @pl.when(i == pl.num_programs(1) - 1)
    def _finalize():
        ssum = s_ref[0, 0:1, :]
        ssq = s_ref[0, 1:2, :]
        mean = ssum * inv_vol
        var = ssq * inv_vol - mean * mean            # biased variance (InstanceNorm3d)
        s_ref[0, 0:1, :] = mean
        s_ref[0, 1:2, :] = jax.lax.rsqrt(var + EPS)


def instance_stats(x, td):
    N, D, H, W, C = x.shape
    kernel = functools.partial(_instance_stats_kernel, inv_vol=1.0 / float(D * H * W))
    return pl.pallas_call(
        kernel,
        out_shape=jax.ShapeDtypeStruct((N, 2, C), jnp.float32),
        grid=(N, D // td),
        in_specs=[pl.BlockSpec((1, td, H, W, C), lambda n, i: (n, i, 0, 0, 0))],
        out_specs=pl.BlockSpec((1, 2, C), lambda n, i: (n, 0, 0)),
        compiler_params=pltpu.CompilerParams(
            dimension_semantics=("parallel", "arbitrary"),
            vmem_limit_bytes=_vmem_limit_bytes()),
    )(x)


# ---------------------------------------------------------------------------
# Kernel 2b: normalize + LeakyReLU + Conv3d 3x3x3 (pass 2), tiled over D-slabs.
# im2col: all 9 (kh, kw) taps packed on the lane axis (9C channels) of a bf16 scratch
# padded only along D; the kd taps become outermost-axis slices -> 3 MXU matmuls.
# D halos come from clamped halo BlockSpecs (zeroed-by-scale at the volume edges).
# ---------------------------------------------------------------------------
def _norm_relu_conv_kernel(s_ref, x_ref, xt_ref, xb_ref, w_ref, o_ref,
                           pad_ref, acc_ref):
    _, TD, H, W, C = x_ref.shape
    i = pl.program_id(1)
    n_slabs = pl.num_programs(1)

    mean = s_ref[0, 0:1, :]          # (1, C) f32, broadcasts over (R, H, W, C)
    rstd = s_ref[0, 1:2, :]

    # Small broadcastable W-boundary masks (review: no full-volume iota).
    w_iota = jax.lax.broadcasted_iota(jnp.int32, (1, 1, W, 1), 2)
    m_wm1 = w_iota >= 1              # positions with a valid in[w-1] tap
    m_wp1 = w_iota <= W - 2          # positions with a valid in[w+1] tap

    def norm_act(x, scale=None):
        y = (x.astype(jnp.float32) - mean) * rstd
        y = jnp.where(y >= 0.0, y, LRELU * y)
        if scale is not None:
            y = y * scale
        return y

    def im2col_store(row0, y):
        """y: (R, H, W, C) f32 (normalized+activated).  Writes the 9 (kh, kw) taps into
        pad_ref rows [row0, row0+R) as 9 channel-subrange stores (no 9C concat temp)."""
        R = y.shape[0]
        wtaps = (
            jnp.where(m_wm1, pltpu.roll(y, 1, 2), 0.0),       # in[w-1]
            y,                                                # in[w]
            jnp.where(m_wp1, pltpu.roll(y, W - 1, 2), 0.0),   # in[w+1]
        )
        zrow = jnp.zeros((R, 1, W, C), jnp.bfloat16)
        for kw in range(3):
            t = wtaps[kw].astype(jnp.bfloat16)
            for kh in range(3):
                if kh == 0:                                    # in[h-1]
                    s = jnp.concatenate([zrow, t[:, :H - 1]], axis=1)
                elif kh == 2:                                  # in[h+1]
                    s = jnp.concatenate([t[:, 1:], zrow], axis=1)
                else:
                    s = t
                j = kh * 3 + kw
                pad_ref[row0:row0 + R, :, :, j * C:(j + 1) * C] = s

    # D halos: clamped fetches; zeroed (by scale) at the volume edges.
    top_scale = (i > 0).astype(jnp.float32)
    bot_scale = (i < n_slabs - 1).astype(jnp.float32)
    im2col_store(0, norm_act(xt_ref[0], top_scale))
    im2col_store(TD + 1, norm_act(xb_ref[0], bot_scale))
    # Main slab interior.
    im2col_store(1, norm_act(x_ref[0]))

    # 3 MXU matmuls (kd taps).  The operand slices only the outermost scratch axis, so
    # the reshape stays contiguous (no per-tap copies); only 3 accumulator RMWs.
    for kd in range(3):
        patch = pad_ref[kd:kd + TD, :, :, :].reshape(TD * H * W, 9 * C)
        contrib = jnp.dot(patch, w_ref[kd], preferred_element_type=jnp.float32)
        if kd == 0:
            acc_ref[...] = contrib
        else:
            acc_ref[...] += contrib

    o_ref[0] = acc_ref[...].reshape(TD, H, W, C).astype(o_ref.dtype)


def norm_relu_conv(x, stats, w27, td):
    N, D, H, W, C = x.shape
    # (27, C, C) [kd*9+kh*3+kw, ci, co]  ->  (3, 9C, C) [kd, (kh*3+kw)*C + ci, co]
    wg = w27.reshape(3, 9 * C, C).astype(jnp.bfloat16)

    def main_map(n, i):
        return (n, i, 0, 0, 0)

    def top_map(n, i):
        return (n, jnp.maximum(i * td - 1, 0), 0, 0, 0)

    def bot_map(n, i):
        return (n, jnp.minimum(i * td + td, D - 1), 0, 0, 0)

    return pl.pallas_call(
        _norm_relu_conv_kernel,
        out_shape=jax.ShapeDtypeStruct((N, D, H, W, C), jnp.bfloat16),
        grid=(N, D // td),
        in_specs=[
            pl.BlockSpec((1, 2, C), lambda n, i: (n, 0, 0)),          # mean / rstd
            pl.BlockSpec((1, td, H, W, C), main_map),                 # main slab
            pl.BlockSpec((1, 1, H, W, C), top_map),                   # top D halo row
            pl.BlockSpec((1, 1, H, W, C), bot_map),                   # bottom D halo row
            pl.BlockSpec((3, 9 * C, C), lambda n, i: (0, 0, 0)),      # weights (resident)
        ],
        out_specs=pl.BlockSpec((1, td, H, W, C), main_map),
        scratch_shapes=[
            pltpu.VMEM((td + 2, H, W, 9 * C), jnp.bfloat16),          # D-padded im2col
            pltpu.VMEM((td * H * W, C), jnp.float32),                 # f32 conv accumulator
        ],
        compiler_params=pltpu.CompilerParams(
            dimension_semantics=("parallel", "parallel"),
            vmem_limit_bytes=_vmem_limit_bytes()),
    )(stats, x, x, x, wg)


# ---------------------------------------------------------------------------
# Encoder forward (Pallas) and parameter construction
# ---------------------------------------------------------------------------
def encoder_forward(x, params, downsample):
    budget = int(_vmem_limit_bytes() * 0.45)
    if downsample:
        N, D, H, W, Cin = x.shape
        Cout = params["w1x1"].shape[1]
        bpr = (2 * H * W * Cin * x.dtype.itemsize * 2      # input slab, double-buffered
               + (H // 2) * (W // 2) * Cout * 2 * 2)        # bf16 output, double-buffered
        tdp = _largest_divisor_fitting(D // 2, bpr, budget)
        x = pool_conv1x1(x, params["w1x1"], params["b1x1"], tdp)
    # Dropout3d: eval-mode identity.
    # TODO(synk): training-mode stochastic channel dropout (Dropout3d p=0.2) not implemented.
    for w in params["w3x3"]:
        N, D, H, W, C = x.shape
        bpr = H * W * C * (9 * 2    # im2col pad scratch (bf16, 9C)
                           + 4      # f32 accumulator
                           + 2 * 2  # bf16 input slab, double-buffered
                           + 2 * 2)  # bf16 output slab, double-buffered
        td = _largest_divisor_fitting(D, bpr, budget)
        stats = instance_stats(x, td)
        x = norm_relu_conv(x, stats, w, td)
    return x


def make_params(key, in_channel, channels, depth):
    ks = jax.random.split(key, 2 + 2 * depth)
    s1 = 1.0 / np.sqrt(in_channel)
    params = {
        "w1x1": jax.random.uniform(ks[0], (in_channel, channels), jnp.float32, -s1, s1),
        "b1x1": jax.random.uniform(ks[1], (1, channels), jnp.float32, -s1, s1),
        "w3x3": [],
    }
    s3 = 1.0 / np.sqrt(channels * 27)
    for i in range(2 * depth):  # each depth level = 2 BasicBlocks
        params["w3x3"].append(
            jax.random.uniform(ks[2 + i], (27, channels, channels), jnp.float32, -s3, s3))
    return params


# ---------------------------------------------------------------------------
# Pure-JAX f32 reference (for correctness check)
# ---------------------------------------------------------------------------
def encoder_reference(x, params, downsample):
    if downsample:
        x = jax.lax.reduce_window(x, -jnp.inf, jax.lax.max,
                                  (1, 2, 2, 2, 1), (1, 2, 2, 2, 1), "VALID")
        Cin, Cout = params["w1x1"].shape
        x = jax.lax.conv_general_dilated(
            x, params["w1x1"].reshape(1, 1, 1, Cin, Cout), (1, 1, 1), "VALID",
            dimension_numbers=("NDHWC", "DHWIO", "NDHWC"))
        x = x + params["b1x1"].reshape(1, 1, 1, 1, Cout)
    for w in params["w3x3"]:
        C = w.shape[-1]
        mean = x.mean(axis=(1, 2, 3), keepdims=True)
        var = ((x - mean) ** 2).mean(axis=(1, 2, 3), keepdims=True)
        y = (x - mean) / jnp.sqrt(var + EPS)
        y = jnp.where(y >= 0.0, y, LRELU * y)
        x = jax.lax.conv_general_dilated(
            y, w.reshape(3, 3, 3, C, C), (1, 1, 1),
            ((1, 1), (1, 1), (1, 1)),
            dimension_numbers=("NDHWC", "DHWIO", "NDHWC"))
    return x


if __name__ == "__main__":
    # Small shapes: batch=2, in_channel=4, channels=8, spatial=8^3, depth=1.
    N, Cin, Cout, D, H, W, depth = 2, 4, 8, 8, 8, 8, 1
    downsample = Cin != Cout  # True

    key = jax.random.PRNGKey(0)
    kx, kp = jax.random.split(key)
    x = jax.random.normal(kx, (N, D, H, W, Cin), jnp.float32)  # NDHWC
    params = make_params(kp, Cin, Cout, depth)

    out = jax.block_until_ready(encoder_forward(x, params, downsample))
    ref = jax.block_until_ready(encoder_reference(x, params, downsample))

    assert out.shape == (N, D // 2, H // 2, W // 2, Cout), out.shape
    # bf16 activations / MXU operands vs. pure-f32 reference -> relaxed tolerance.
    out_f32 = np.asarray(jax.block_until_ready(out.astype(jnp.float32)))
    np.testing.assert_allclose(out_f32, np.asarray(ref), rtol=5e-2, atol=5e-2)
    print("KERNEL_OK")
</pallas_src>

<mosaic_0001>
module attributes {stable_mosaic.version = 11 : i64} {
  func.func @_pool_conv1x1_kernel(%arg0: i32, %arg1: i32, %arg2: memref<1x8x8x8x4xf32, #tpu.memory_space<vmem>>, %arg3: memref<4x8xbf16, #tpu.memory_space<vmem>>, %arg4: memref<1x8xf32, #tpu.memory_space<vmem>>, %arg5: memref<1x4x4x4x8xbf16, #tpu.memory_space<vmem>>) attributes {dimension_semantics = [#tpu.dimension_semantics<parallel>, #tpu.dimension_semantics<parallel>], iteration_bounds = array<i64: 2, 1>, scalar_prefetch = 0 : i64, scratch_operands = 0 : i64, tpu.core_type = #tpu.core_type<tc>, window_params = [{transform_indices = @transform_0, window_bounds = array<i64: 1, 8, 8, 8, 4>}, {pipeline_mode = #tpu.pipeline_mode<synchronous>, transform_indices = @transform_1, window_bounds = array<i64: 4, 8>}, {pipeline_mode = #tpu.pipeline_mode<synchronous>, transform_indices = @transform_2, window_bounds = array<i64: 1, 8>}, {transform_indices = @transform_3, window_bounds = array<i64: 1, 4, 4, 4, 8>}]} {
    %c0 = arith.constant 0 : index
    %c0_0 = arith.constant 0 : index
    %c0_1 = arith.constant 0 : index
    %c0_2 = arith.constant 0 : index
    %c0_3 = arith.constant 0 : index
    %0 = vector.load %arg2[%c0, %c0_0, %c0_1, %c0_2, %c0_3] : memref<1x8x8x8x4xf32, #tpu.memory_space<vmem>>, vector<1x8x8x8x4xf32>
    %1 = vector.shape_cast %0 : vector<1x8x8x8x4xf32> to vector<8x8x8x4xf32>
    %2 = vector.shape_cast %1 : vector<8x8x8x4xf32> to vector<4x2x8x8x4xf32>
    %cst = arith.constant dense<0xFF800000> : vector<4x8x8x4xf32>
    %3 = vector.multi_reduction <maximumf>, %2, %cst [1] : vector<4x2x8x8x4xf32> to vector<4x8x8x4xf32>
    %4 = vector.shape_cast %3 : vector<4x8x8x4xf32> to vector<4x4x2x8x4xf32>
    %cst_4 = arith.constant dense<0xFF800000> : vector<4x4x8x4xf32>
    %5 = vector.multi_reduction <maximumf>, %4, %cst_4 [2] : vector<4x4x2x8x4xf32> to vector<4x4x8x4xf32>
    %6 = vector.shape_cast %5 : vector<4x4x8x4xf32> to vector<4x4x4x2x4xf32>
    %cst_5 = arith.constant dense<0xFF800000> : vector<4x4x4x4xf32>
    %7 = vector.multi_reduction <maximumf>, %6, %cst_5 [3] : vector<4x4x4x2x4xf32> to vector<4x4x4x4xf32>
    %8 = vector.shape_cast %7 : vector<4x4x4x4xf32> to vector<64x4xf32>
    %9 = arith.truncf %8 : vector<64x4xf32> to vector<64x4xbf16>
    %c0_6 = arith.constant 0 : index
    %c0_7 = arith.constant 0 : index
    %10 = vector.load %arg3[%c0_6, %c0_7] : memref<4x8xbf16, #tpu.memory_space<vmem>>, vector<4x8xbf16>
    %cst_8 = arith.constant dense<0.000000e+00> : vector<64x8xf32>
    %11 = tpu.matmul %9, %10, %cst_8 {dimension_numbers = #tpu.dot_dimension_numbers<[1], [0], [0], [1], [0, 0, 1, 1], [], []>} : vector<64x4xbf16>, vector<4x8xbf16>, vector<64x8xf32> -> vector<64x8xf32>
    %c0_9 = arith.constant 0 : index
    %c0_10 = arith.constant 0 : index
    %12 = vector.load %arg4[%c0_9, %c0_10] : memref<1x8xf32, #tpu.memory_space<vmem>>, vector<1x8xf32>
    %13 = vector.broadcast %12 : vector<1x8xf32> to vector<64x8xf32>
    %14 = arith.addf %11, %13 : vector<64x8xf32>
    %15 = vector.shape_cast %14 : vector<64x8xf32> to vector<4x4x4x8xf32>
    %16 = arith.truncf %15 : vector<4x4x4x8xf32> to vector<4x4x4x8xbf16>
    %c0_11 = arith.constant 0 : index
    %c0_12 = arith.constant 0 : index
    %c0_13 = arith.constant 0 : index
    %c0_14 = arith.constant 0 : index
    %c0_15 = arith.constant 0 : index
    %17 = vector.load %arg5[%c0_11, %c0_12, %c0_13, %c0_14, %c0_15] : memref<1x4x4x4x8xbf16, #tpu.memory_space<vmem>>, vector<1x4x4x4x8xbf16>
    %18 = vector.shape_cast %17 : vector<1x4x4x4x8xbf16> to vector<4x4x4x8xbf16>
    %19 = vector.shape_cast %16 : vector<4x4x4x8xbf16> to vector<1x4x4x4x8xbf16>
    tpu.vector_store %arg5[%c0_11, %c0_12, %c0_13, %c0_14, %c0_15], %19 {strides = array<i32>} : memref<1x4x4x4x8xbf16, #tpu.memory_space<vmem>>, vector<1x4x4x4x8xbf16>,
    return
  }
  func.func @transform_0(%arg0: i32, %arg1: i32) -> (i32, i32, i32, i32, i32) {
    %c0_i32 = arith.constant 0 : i32
    %c0_i32_0 = arith.constant 0 : i32
    %c0_i32_1 = arith.constant 0 : i32
    %c0_i32_2 = arith.constant 0 : i32
    return %arg0, %arg1, %c0_i32, %c0_i32_0, %c0_i32_1 : i32, i32, i32, i32, i32
  }
  func.func @transform_1(%arg0: i32, %arg1: i32) -> (i32, i32) {
    %c0_i32 = arith.constant 0 : i32
    %c0_i32_0 = arith.constant 0 : i32
    %c0_i32_1 = arith.constant 0 : i32
    return %c0_i32, %c0_i32_0 : i32, i32
  }
  func.func @transform_2(%arg0: i32, %arg1: i32) -> (i32, i32) {
    %c0_i32 = arith.constant 0 : i32
    %c0_i32_0 = arith.constant 0 : i32
    %c0_i32_1 = arith.constant 0 : i32
    return %c0_i32, %c0_i32_0 : i32, i32
  }
  func.func @transform_3(%arg0: i32, %arg1: i32) -> (i32, i32, i32, i32, i32) {
    %c0_i32 = arith.constant 0 : i32
    %c0_i32_0 = arith.constant 0 : i32
    %c0_i32_1 = arith.constant 0 : i32
    %c0_i32_2 = arith.constant 0 : i32
    return %arg0, %arg1, %c0_i32, %c0_i32_0, %c0_i32_1 : i32, i32, i32, i32, i32
  }
}

</mosaic_0001>

<bundles_post_ra>
// kernel: tpu_custom_call.1
= control target key start
LH: loop header
LB: loop body
LE: loop exit
PB: predicated region body
PF: predicated region fallthrough
CT: control target
= control target key end

     0   :  { %8 = vsyncpa [#allocation3], 0  ;;  %s2629_s0 = inlined_call_operand.vmem [shape: f32[2,8,8,8,4], index: 0, kind: input, shape index: {}]   ;;  %s2630_s1 = inlined_call_operand.vmem [shape: bf16[4,8], index: 1, kind: input, shape index: {}]   ;;  %s2631_s2 = inlined_call_operand.vmem [shape: f32[1,8], index: 2, kind: input, shape index: {}]   ;;  %s2632_s3 = inlined_call_operand.hbm [shape: bf16[2,4,4,4,8], index: 3, kind: output, shape index: {}]  }
   0x1   :  { %10 = vsyncpa [#allocation3 + $0x1], 0  ;;  %s1919_s12 = smov 0   ;;  %s1921_s13 = smov 0  }
   0x2   :  { %s1923_s14 = smov 0   ;;  %s1925_s15 = smov 0  }
   0x3   :  { %s1927_s16 = smov 0   ;;  %s1929_s17 = smov 0  }
   0x4 LB: > { %s1718_s18 = sadd.s32 4294967295, %s1893_s17   ;;  %s1719_s19 = sadd.s32 4294967294, %s1893_s17   ;;  %s1893_s17 = sphi %s1929_s17, %s16_s17   ;;  %s1889_s16 = sphi %s1927_s16, %s2639_s16   ;;  %s1885_s15 = sphi %s1925_s15, %s2638_s15   ;;  %s1881_s14 = sphi %s1923_s14, %s2637_s14   ;;  %s1877_s13 = sphi %s1921_s13, %s2636_s13   ;;  %s1873_s12 = sphi %s1919_s12, %s2635_s12  }
   0x5   : > { %s28_s20 = sadd.s32 1, %s1889_s16  ;;  %s107_s21 = sadd.s32 1, %s1881_s14 }
   0x6   : > { %p30_p0 = scmp.ge.s32.totalorder %s28_s20, 2  ;;  %p117_p1 = scmp.ne.s32.totalorder %s1881_s14, %s1877_s13 }
   0x7   : > { %p118_p2 = scmp.eq.s32.totalorder %s1718_s18, 1  ;;  %p123_p3 = scmp.ne.s32.totalorder %s1877_s13, %s1873_s12 }
   0x8   : > { %s2641_s20 = smov (%p30_p0, %s28_s20), 0  ;;  %p124_p5 = scmp.eq.s32.totalorder %s1719_s19, 1 }
   0x9   : > { %p1959_p4 = por %p118_p2, %p117_p1  ;;  %s102_s23 = ssub.s32 %s1889_s16, %s2641_s20 }
   0xa   : > { %p1722_p6 = scmp.ge.s32.totalorder %s1893_s17, 1  ;;  %p105_p7 = scmp.eq.s32.totalorder %s102_s23, 0 }
   0xb   : > { %p1966_p8 = por %p124_p5, %p123_p3  ;;  %p162_p9 = scmp.lt.s32.totalorder %s1893_s17, 3 }
   0xc   : > { %s1972_s25 = scalar_select %p105_p7, %s1881_s14, %s107_s21  }
   0xd   : > { %p163_p10 = pnand %p1722_p6, %p162_p9 }
   0xe   : > { %v1278_v0 = vld [vmem:[%s2630_s1] sm:$0x3] (!%p163_p10)  ;;  %vm1493_vm0 = vcmask (!%p163_p10), 1041408   ;;  %p192_p11 = scmp.lt.s32.totalorder (!%p163_p10), %s1885_s15, 1  ;;  %v433_v2 = vlaneseq (!%p163_p10)  ;;  %v1895_v3 = vmov (!%p163_p10), 1983009808  }
   0xf   : > { %166 = sbr.rel (%p163_p10) target bundleno = 483 (0x1e3), region = 32  ;;  %1755 = vmatprep.subr.msk.bf16.mxu0 (!%p163_p10), %vm1493_vm0, %v1278_v0  ;;  %1756 = vmatprep.subr.msk.bf16.mxu1 (!%p163_p10), %vm1493_vm0, %v1278_v0  ;;  %v1495_v1 = vsel (!%p163_p10), %vm1493_vm0, %v1278_v0, 0  ;;  %v431_v4 = vunpack.c.l.s4 (!%p163_p10), %v1895_v3  ;;  %vm268_vm1 = vcmask (!%p163_p10), 31744   ;;  %vm765_vm2 = vcmask (!%p163_p10), 25600   ;;  %s188_s6 = sand.u32 (!%p163_p10), 1, %s1877_s13  }
  0x10   : > { %1744 = vmatpush3.bf16.msra.mxu0 (!%p163_p10), %v1495_v1  ;;  %1754 = vmatpush3.bf16.msra.mxu1 (!%p163_p10), %v1495_v1  ;;  %v434_v6 = vshrl.u32 (!%p163_p10), %v433_v2, 7  ;;  %vm1414_vm3 = vcmask (!%p163_p10), 1041409   ;;  %vm1416_vm4 = vcmask (!%p163_p10), 1042434   ;;  %vm1418_vm5 = vcmask (!%p163_p10), 1043459   ;;  %s1723_s9 = sshll.u32 (!%p163_p10), %s188_s6, 5  ;;  %s1737_s11 = sshll.u32 (!%p163_p10), %s1885_s15, 9 }
  0x11   : > { %v432_v5 = vunpack.c.0.s8 (!%p163_p10), %v431_v4  ;;  %vm1420_vm6 = vcmask (!%p163_p10), 1044484   ;;  %vm1422_vm7 = vcmask (!%p163_p10), 1045509   ;;  %vm1424_vm8 = vcmask (!%p163_p10), 1046534   ;;  %s2538_s10 = scalar_lea.vmem (!%p163_p10), [#allocation2], %s1723_s9  ;;  %s2569_s21 = scalar_lea.hbm (!%p163_p10), %s2632_s3, %s1737_s11 }
  0x12   : > { %vm1426_vm9 = vcmask (!%p163_p10), 1047559   ;;  %vm1602_vm10 = vcmask (!%p163_p10), 58368   ;;  %s1636_s18 = sshll.u32 (!%p163_p10), %s2538_s10, 4  ;;  %s2583_s23 = scalar_lea.sflag (!%p163_p10), [#allocation3], %s188_s6  ;;  %s2571_s18 = int_to_ptr.vmem [resolvable:$true] %s1636_s18 }
  0x13   : > { %v2005_v28 = vsub.s32 (!%p163_p10), %v432_v5, %v434_v6  ;;  %s1815_s26 = scalar_lea.vmem (!%p163_p10), %s2571_s18, 512  ;;  %s1896_s27 = smov (!%p163_p10), [#allocation2]  }
  0x14   : > { %p1816_p12 = scmp.ne.s32.totalorder (!%p163_p10), %s2571_s18, %s1815_s26 }
  0x16   : > { %s193_s28 = scalar_select %p192_p11, %s1885_s15, 1 }
  0x17   : > { %p1817_p13 = pnand %p1816_p12, %p1959_p4 }
  0x18   : > { %s1736_s29 = sshll.u32 %s193_s28, 9  ;;  %s1819_s28 = sshll.u32 %s1896_s27, 4  ;;  %s1820_s28 = int_to_ptr.vmem [resolvable:$false] %s1819_s28 }
  0x19   : > { %s1982_s5 = scalar_lea.vmem %s2629_s0, %s1736_s29  ;;  %p1818_p0 = pneg %p1817_p13 }
  0x1a   : > { %v204_v7 = vld [vmem:[%s1982_s5] sm:$0xff]  ;;  %v205_v8 = vld [vmem:[%s1982_s5 + $0x8] sm:$0xff]  ;;  %v206_v9 = vld [vmem:[%s1982_s5 + $0x10] sm:$0xff]  ;;  %s1821_s29 = scalar_lea.vmem %s1820_s28, 1024  ;;  %p1822_p1 = scmp.lt.s32.totalorder %s2571_s18, %s1820_s28 }
  0x1b   : > { %v207_v10 = vld [vmem:[%s1982_s5 + $0x18] sm:$0xff]  ;;  %v208_v11 = vld [vmem:[%s1982_s5 + $0x20] sm:$0xff]  ;;  %v209_v12 = vld [vmem:[%s1982_s5 + $0x28] sm:$0xff]  ;;  %v269_v13 = vsel %vm268_vm1, %v204_v7, -inf  ;;  %v272_v14 = vsel %vm268_vm1, %v205_v8, -inf  ;;  %v275_v15 = vsel %vm268_vm1, %v206_v9, -inf  ;;  %p1823_p2 = scmp.lt.s32.totalorder %s1821_s29, %s1815_s26 }
  0x1c   : > { %v210_v16 = vld [vmem:[%s1982_s5 + $0x30] sm:$0xff]  ;;  %v211_v17 = vld [vmem:[%s1982_s5 + $0x38] sm:$0xff]  ;;  %v212_v18 = vld [vmem:[%s1982_s5 + $0x40] sm:$0xff]  ;;  %v278_v19 = vsel %vm268_vm1, %v207_v10, -inf  ;;  %v281_v20 = vsel %vm268_vm1, %v208_v11, -inf  ;;  %v284_v21 = vsel %vm268_vm1, %v209_v12, -inf }
  0x1d   : > { %v213_v22 = vld [vmem:[%s1982_s5 + $0x48] sm:$0xff]  ;;  %v214_v23 = vld [vmem:[%s1982_s5 + $0x50] sm:$0xff]  ;;  %v215_v24 = vld [vmem:[%s1982_s5 + $0x58] sm:$0xff]  ;;  %v270_v25 = vsel %vm268_vm1, %v212_v18, -inf  ;;  %v287_v26 = vsel %vm268_vm1, %v210_v16, -inf  ;;  %v290_v27 = vsel %vm268_vm1, %v211_v17, -inf  ;;  %p1824_p3 = por %p1823_p2, %p1822_p1 }
  0x1e   : > { %v216_v29 = vld [vmem:[%s1982_s5 + $0x60] sm:$0xff]  ;;  %v217_v30 = vld [vmem:[%s1982_s5 + $0x68] sm:$0xff]  ;;  %v218_v31 = vld [vmem:[%s1982_s5 + $0x70] sm:$0xff]  ;;  %v271_v32 = vmax.f32 %v269_v13, %v270_v25  ;;  %v273_v33 = vsel %vm268_vm1, %v213_v22, -inf  ;;  %v276_v34 = vsel %vm268_vm1, %v214_v23, -inf  ;;  %v279_v35 = vsel %vm268_vm1, %v215_v24, -inf }
  0x1f   : > { %v219_v36 = vld [vmem:[%s1982_s5 + $0x78] sm:$0xff]  ;;  %v274_v37 = vmax.f32 %v272_v14, %v273_v33  ;;  %v277_v38 = vmax.f32 %v275_v15, %v276_v34  ;;  %v280_v39 = vmax.f32 %v278_v19, %v279_v35  ;;  %v282_v40 = vsel %vm268_vm1, %v216_v29, -inf  ;;  %v236_v49 = vld [vmem:[%s1982_s5 + $0x100] sm:$0xff]  ;;  %p1825_p5 = pnand %p1824_p3, %p1818_p0 }
  0x20   : > { %v283_v41 = vmax.f32 %v281_v20, %v282_v40  ;;  %v285_v42 = vsel %vm268_vm1, %v217_v30, -inf  ;;  %v288_v43 = vsel %vm268_vm1, %v218_v31, -inf  ;;  %v291_v44 = vsel %vm268_vm1, %v219_v36, -inf  ;;  %v244_v54 = vld [vmem:[%s1982_s5 + $0x140] sm:$0xff] }
  0x21   : > { %v286_v45 = vmax.f32 %v284_v21, %v285_v42  ;;  %v289_v46 = vmax.f32 %v287_v26, %v288_v43  ;;  %v292_v47 = vmax.f32 %v290_v27, %v291_v44  ;;  %v365_v48 = vsel %vm268_vm1, %v271_v32, -inf }
  0x22   : > { %v366_v50 = vsel %vm268_vm1, %v274_v37, -inf  ;;  %v368_v51 = vsel %vm268_vm1, %v277_v38, -inf  ;;  %v369_v52 = vsel %vm268_vm1, %v280_v39, -inf  ;;  %v371_v53 = vsel %vm268_vm1, %v283_v41, -inf }
  0x23   : > { %v367_v55 = vmax.f32 %v365_v48, %v366_v50  ;;  %v370_v56 = vmax.f32 %v368_v51, %v369_v52  ;;  %v372_v57 = vsel %vm268_vm1, %v286_v45, -inf  ;;  %v374_v58 = vsel %vm268_vm1, %v289_v46, -inf }
  0x24   : > { %v373_v59 = vmax.f32 %v371_v53, %v372_v57  ;;  %v375_v60 = vsel %vm268_vm1, %v292_v47, -inf  ;;  %v2029_v61 = vsel %vm268_vm1, %v236_v49, -inf  ;;  %v2032_v62 = vsel %vm268_vm1, %v244_v54, -inf }
  0x25   : > { %v376_v63 = vmax.f32 %v374_v58, %v375_v60  ;;  %v429_v0 = vcombine.high %v367_v55, %v367_v55  ;;  %v436_v1 = vrot.slane %v367_v55, %v2005_v28  ;;  %v446_v2 = vcombine.high %v370_v56, %v370_v56 }
  0x26   : > { %v453_v3 = vrot.slane %v370_v56, %v2005_v28  ;;  %v463_v4 = vcombine.high %v373_v59, %v373_v59  ;;  %v2037_v5 = vrot.slane %v373_v59, %v2005_v28  ;;  %v319_v6 = vmax.f32 %v2029_v61, %v2032_v62 }
  0x27   : > { %v443_v7 = vrot.slane %v429_v0, %v2005_v28  ;;  %v444_v8 = vcombine.high %v436_v1, %v436_v1  ;;  %v460_v9 = vrot.slane %v446_v2, %v2005_v28  ;;  %v480_v10 = vcombine.high %v376_v63, %v376_v63 }
  0x28   : > { %v461_v11 = vcombine.high %v453_v3, %v453_v3  ;;  %v2044_v12 = vrot.slane %v463_v4, %v2005_v28  ;;  %v478_v13 = vcombine.high %v2037_v5, %v2037_v5  ;;  %v2049_v14 = vrot.slane %v376_v63, %v2005_v28 }
  0x29   : > { %v445_v15 = vcombine.high %v443_v7, %v443_v7  ;;  %v462_v16 = vcombine.high %v460_v9, %v460_v9  ;;  %v2052_v17 = vrot.slane %v480_v10, %v2005_v28  ;;  %v766_v18 = vsel %vm765_vm2, %v436_v1, -inf }
  0x2a   : > { %v479_v19 = vcombine.high %v2044_v12, %v2044_v12  ;;  %v495_v20 = vcombine.high %v2049_v14, %v2049_v14  ;;  %v767_v21 = vrot.slane %v766_v18, 4  ;;  %v773_v22 = vsel %vm765_vm2, %v444_v8, -inf }
  0x2b   : > { %v496_v23 = vcombine.high %v2052_v17, %v2052_v17  ;;  %v774_v24 = vrot.slane %v773_v22, 4  ;;  %v780_v25 = vsel %vm765_vm2, %v443_v7, -inf  ;;  %v787_v26 = vsel %vm765_vm2, %v445_v15, -inf }
  0x2c   : > { %v768_v27 = vmax.f32 %v766_v18, %v767_v21  ;;  %v781_v29 = vrot.slane %v780_v25, 4  ;;  %v788_v30 = vrot.slane %v787_v26, 4  ;;  %v794_v31 = vsel %vm765_vm2, %v453_v3, -inf }
  0x2d   : > { %v775_v32 = vmax.f32 %v773_v22, %v774_v24  ;;  %v795_v33 = vrot.slane %v794_v31, 4  ;;  %v801_v34 = vsel %vm765_vm2, %v461_v11, -inf  ;;  %v808_v35 = vsel %vm765_vm2, %v460_v9, -inf }
  0x2e   : > { %v769_v36 = vrot.slane %v768_v27, 2  ;;  %v782_v37 = vmax.f32 %v780_v25, %v781_v29  ;;  %v789_v38 = vmax.f32 %v787_v26, %v788_v30  ;;  %v802_v39 = vrot.slane %v801_v34, 4 }
  0x2f   : > { %v776_v40 = vrot.slane %v775_v32, 2  ;;  %v796_v41 = vmax.f32 %v794_v31, %v795_v33  ;;  %v809_v42 = vrot.slane %v808_v35, 4  ;;  %v815_v43 = vsel %vm765_vm2, %v462_v16, -inf }
  0x30   : > { %v770_v44 = vmax.f32 %v768_v27, %v769_v36  ;;  %v783_v45 = vrot.slane %v782_v37, 2  ;;  %v790_v46 = vrot.slane %v789_v38, 2  ;;  %v803_v47 = vmax.f32 %v801_v34, %v802_v39 }
  0x31   : > { %v777_v48 = vmax.f32 %v775_v32, %v776_v40  ;;  %v797_v49 = vrot.slane %v796_v41, 2  ;;  %v810_v50 = vmax.f32 %v808_v35, %v809_v42  ;;  %v816_v51 = vrot.slane %v815_v43, 4 }
  0x32   : > { %v771_v52 = vrot.slane %v770_v44, 1  ;;  %v784_v53 = vmax.f32 %v782_v37, %v783_v45  ;;  %v791_v54 = vmax.f32 %v789_v38, %v790_v46  ;;  %v804_v55 = vrot.slane %v803_v47, 2 }
  0x33   : > { %v778_v56 = vrot.slane %v777_v48, 1  ;;  %v798_v57 = vmax.f32 %v796_v41, %v797_v49  ;;  %v811_v58 = vrot.slane %v810_v50, 2  ;;  %v817_v59 = vmax.f32 %v815_v43, %v816_v51 }
  0x34   : > { %v2068_v60 = vmax.f32 %v770_v44, %v771_v52  ;;  %v785_v63 = vrot.slane %v784_v53, 1  ;;  %v792_v0 = vrot.slane %v791_v54, 1  ;;  %v805_v1 = vmax.f32 %v803_v47, %v804_v55 }
  0x35   : > { %v2070_v2 = vmax.f32 %v777_v48, %v778_v56  ;;  %v799_v3 = vrot.slane %v798_v57, 1  ;;  %v812_v4 = vmax.f32 %v810_v50, %v811_v58  ;;  %v818_v7 = vrot.slane %v817_v59, 2 }
  0x36   : > { %v2072_v8 = vmax.f32 %v784_v53, %v785_v63  ;;  %v2074_v9 = vmax.f32 %v791_v54, %v792_v0  ;;  %v806_v10 = vrot.slane %v805_v1, 1  ;;  %v822_v11 = vsel %vm765_vm2, %v2037_v5, -inf }
  0x37   : > { %v2078_v15 = vmax.f32 %v798_v57, %v799_v3  ;;  %v813_v16 = vrot.slane %v812_v4, 1  ;;  %v819_v18 = vmax.f32 %v817_v59, %v818_v7  ;;  %v823_v21 = vrot.slane %v822_v11, 4 }
  0x38   : > { %v2080_v22 = vmax.f32 %v805_v1, %v806_v10  ;;  %v829_v24 = vsel %vm765_vm2, %v478_v13, -inf  ;;  %v836_v25 = vsel %vm765_vm2, %v2044_v12, -inf  ;;  %v843_v26 = vsel %vm765_vm2, %v479_v19, -inf }
  0x39   : > { %v2089_v27 = vmax.f32 %v812_v4, %v813_v16  ;;  %v820_v29 = vrot.slane %v819_v18, 1  ;;  %v824_v30 = vmax.f32 %v822_v11, %v823_v21  ;;  %v830_v31 = vrot.slane %v829_v24, 4 }
  0x3a   : > { %v837_v32 = vrot.slane %v836_v25, 4  ;;  %v844_v33 = vrot.slane %v843_v26, 4  ;;  %v850_v34 = vsel %vm765_vm2, %v2049_v14, -inf  ;;  %v857_v5 = vsel %vm765_vm2, %v495_v20, -inf }
  0x3b   : > { %v2097_v13 = vmax.f32 %v819_v18, %v820_v29  ;;  %v825_v12 = vrot.slane %v824_v30, 2  ;;  %v831_v35 = vmax.f32 %v829_v24, %v830_v31  ;;  %v851_v19 = vrot.slane %v850_v34, 4 }
  0x3c   : > { %v838_v36 = vmax.f32 %v836_v25, %v837_v32  ;;  %v845_v37 = vmax.f32 %v843_v26, %v844_v33  ;;  %v858_v38 = vrot.slane %v857_v5, 4  ;;  %v864_v39 = vsel %vm765_vm2, %v2052_v17, -inf }
  0x3d   : > { %v826_v40 = vmax.f32 %v824_v30, %v825_v12  ;;  %v832_v41 = vrot.slane %v831_v35, 2  ;;  %v852_v42 = vmax.f32 %v850_v34, %v851_v19  ;;  %v865_v43 = vrot.slane %v864_v39, 4 }
  0x3e   : > { %v839_v44 = vrot.slane %v838_v36, 2  ;;  %v846_v45 = vrot.slane %v845_v37, 2  ;;  %v859_v14 = vmax.f32 %v857_v5, %v858_v38  ;;  %v871_v20 = vsel %vm765_vm2, %v496_v23, -inf }
  0x3f   : > { %v827_v46 = vrot.slane %v826_v40, 1  ;;  %v833_v47 = vmax.f32 %v831_v35, %v832_v41  ;;  %v853_v48 = vrot.slane %v852_v42, 2  ;;  %v866_v49 = vmax.f32 %v864_v39, %v865_v43 }
  0x40   : > { %v840_v50 = vmax.f32 %v838_v36, %v839_v44  ;;  %v847_v51 = vmax.f32 %v845_v37, %v846_v45  ;;  %v860_v52 = vrot.slane %v859_v14, 2  ;;  %v872_v53 = vrot.slane %v871_v20, 4  ;;  %v237_v44 = vld [vmem:[%s1982_s5 + $0x108] sm:$0xff] }
  0x41   : > { %v828_v54 = vmax.f32 %v826_v40, %v827_v46  ;;  %v834_v55 = vrot.slane %v833_v47, 1  ;;  %v854_v56 = vmax.f32 %v852_v42, %v853_v48  ;;  %v867_v57 = vrot.slane %v866_v49, 2  ;;  %v245_v45 = vld [vmem:[%s1982_s5 + $0x148] sm:$0xff]  ;;  %v238_v48 = vld [vmem:[%s1982_s5 + $0x110] sm:$0xff] }
  0x42   : > { %v841_v58 = vrot.slane %v840_v50, 1  ;;  %v848_v59 = vrot.slane %v847_v51, 1  ;;  %v861_v63 = vmax.f32 %v859_v14, %v860_v52  ;;  %v873_v0 = vmax.f32 %v871_v20, %v872_v53  ;;  %v239_v53 = vld [vmem:[%s1982_s5 + $0x118] sm:$0xff] }
  0x43   : > { %v835_v1 = vmax.f32 %v833_v47, %v834_v55  ;;  %v855_v17 = vrot.slane %v854_v56, 1  ;;  %v868_v3 = vmax.f32 %v866_v49, %v867_v57  ;;  %v1214_v23 = vpack.c.bf16 %v2068_v60, %v2068_v60  ;;  %v247_v57 = vld [vmem:[%s1982_s5 + $0x158] sm:$0xff] }
  0x44   : > { %v842_v4 = vmax.f32 %v840_v50, %v841_v58  ;;  %v849_v7 = vmax.f32 %v847_v51, %v848_v59  ;;  %v862_v10 = vrot.slane %v861_v63, 1  ;;  %v874_v11 = vrot.slane %v873_v0, 2 }
  0x45   : > { %v856_v16 = vmax.f32 %v854_v56, %v855_v17  ;;  %v869_v18 = vrot.slane %v868_v3, 1  ;;  %v1215_v21 = vpack.c.bf16 %v2070_v2, %v2070_v2  ;;  %v1216_v24 = vpack.c.bf16 %v2072_v8, %v2072_v8 }
  0x46   : > { %v863_v25 = vmax.f32 %v861_v63, %v862_v10  ;;  %v875_v26 = vmax.f32 %v873_v0, %v874_v11  ;;  %v1217_v60 = vpack.c.bf16 %v2074_v9, %v2074_v9  ;;  %v1218_v29 = vpack.c.bf16 %v2078_v15, %v2078_v15  ;;  %v248_v10 = vld [vmem:[%s1982_s5 + $0x160] sm:$0xff] }
  0x47   : > { %v870_v30 = vmax.f32 %v868_v3, %v869_v18  ;;  %v1219_v31 = vpack.c.bf16 %v2080_v22, %v2080_v22  ;;  %v1220_v2 = vpack.c.bf16 %v2089_v27, %v2089_v27  ;;  %v1221_v8 = vpack.c.bf16 %v2097_v13, %v2097_v13 }
  0x48   : > { %v876_v32 = vrot.slane %v875_v26, 1  ;;  %v1222_v33 = vpack.c.bf16 %v828_v54, %v828_v54  ;;  %v1223_v34 = vpack.c.bf16 %v835_v1, %v835_v1  ;;  %v1224_v5 = vpack.c.bf16 %v842_v4, %v842_v4  ;;  %v246_v54 = vld [vmem:[%s1982_s5 + $0x150] sm:$0xff]  ;;  %v240_v1 = vld [vmem:[%s1982_s5 + $0x120] sm:$0xff] }
  0x49   : > { %v1225_v9 = vpack.c.bf16 %v849_v7, %v849_v7  ;;  %v1226_v12 = vpack.c.bf16 %v856_v16, %v856_v16  ;;  %v1227_v15 = vpack.c.bf16 %v863_v25, %v863_v25  ;;  %v1228_v35 = vpack.c.bf16 %v870_v30, %v870_v30  ;;  %v241_v7 = vld [vmem:[%s1982_s5 + $0x128] sm:$0xff] }
  0x4a   : > { %v877_v22 = vmax.f32 %v875_v26, %v876_v32  ;;  %v1350_v19 = vunpack.c.l.b16 %v1214_v23  ;;  %v1351_v36 = vunpack.c.l.b16 %v1215_v21  ;;  %v1352_v27 = vunpack.c.l.b16 %v1216_v24  ;;  %v242_v24 = vld [vmem:[%s1982_s5 + $0x130] sm:$0xff]  ;;  %v249_v25 = vld [vmem:[%s1982_s5 + $0x168] sm:$0xff] }
  0x4b   : > { %v1353_v37 = vunpack.c.l.b16 %v1217_v60  ;;  %v1354_v13 = vunpack.c.l.b16 %v1218_v29  ;;  %v1355_v38 = vunpack.c.l.b16 %v1219_v31  ;;  %v1356_v39 = vunpack.c.l.b16 %v1220_v2  ;;  %v243_v31 = vld [vmem:[%s1982_s5 + $0x138] sm:$0xff]  ;;  %v250_v2 = vld [vmem:[%s1982_s5 + $0x170] sm:$0xff] }
  0x4c   : > { %v1229_v40 = vpack.c.bf16 %v877_v22, %v877_v22  ;;  %v1357_v41 = vunpack.c.l.b16 %v1221_v8  ;;  %v1358_v42 = vunpack.c.l.b16 %v1222_v33  ;;  %v1359_v43 = vunpack.c.l.b16 %v1223_v34  ;;  %v251_v8 = vld [vmem:[%s1982_s5 + $0x178] sm:$0xff] }
  0x4d   : > { %v1360_v14 = vunpack.c.l.b16 %v1224_v5  ;;  %v1361_v20 = vunpack.c.l.b16 %v1225_v9  ;;  %v1362_v46 = vunpack.c.l.b16 %v1226_v12  ;;  %v1363_v47 = vunpack.c.l.b16 %v1227_v15 }
  0x4e   : > { %v1364_v49 = vunpack.c.l.b16 %v1228_v35  ;;  %v1365_v50 = vunpack.c.l.b16 %v1229_v40  ;;  %v1415_v51 = vsel %vm1414_vm3, %v1351_v36, %v1350_v19  ;;  %v1428_v52 = vsel %vm1414_vm3, %v1359_v43, %v1358_v42 }
  0x4f   : > { %v1417_v55 = vsel %vm1416_vm4, %v1352_v27, %v1415_v51  ;;  %v1429_v56 = vsel %vm1416_vm4, %v1360_v14, %v1428_v52  ;;  %v320_v58 = vsel %vm268_vm1, %v237_v44, -inf  ;;  %v321_v59 = vsel %vm268_vm1, %v245_v45, -inf  ;;  %v220_v14 = vld [vmem:[%s1982_s5 + $0x80] sm:$0xff] }
  0x50   : > { %v1419_v63 = vsel %vm1418_vm5, %v1353_v37, %v1417_v55  ;;  %v1430_v0 = vsel %vm1418_vm5, %v1361_v20, %v1429_v56  ;;  %v322_v17 = vmax.f32 %v320_v58, %v321_v59  ;;  %v323_v3 = vsel %vm268_vm1, %v238_v48, -inf  ;;  %v228_v20 = vld [vmem:[%s1982_s5 + $0xc0] sm:$0xff] }
  0x51   : > { %v1421_v23 = vsel %vm1420_vm6, %v1354_v13, %v1419_v63  ;;  %v1431_v4 = vsel %vm1420_vm6, %v1362_v46, %v1430_v0  ;;  %v324_v11 = vsel %vm268_vm1, %v246_v54, -inf  ;;  %v326_v16 = vsel %vm268_vm1, %v239_v53, -inf }
  0x52   : > { %v1423_v18 = vsel %vm1422_vm7, %v1355_v38, %v1421_v23  ;;  %v1432_v21 = vsel %vm1422_vm7, %v1363_v47, %v1431_v4  ;;  %v325_v26 = vmax.f32 %v323_v3, %v324_v11  ;;  %v327_v60 = vsel %vm268_vm1, %v247_v57, -inf }
  0x53   : > { %v1425_v29 = vsel %vm1424_vm8, %v1356_v39, %v1423_v18  ;;  %v1433_v30 = vsel %vm1424_vm8, %v1364_v49, %v1432_v21  ;;  %v328_v32 = vmax.f32 %v326_v16, %v327_v60  ;;  %v329_v33 = vsel %vm268_vm1, %v240_v1, -inf }
  0x54   : > { %v1427_v34 = vsel %vm1426_vm9, %v1357_v41, %v1425_v29  ;;  %v1434_v5 = vsel %vm1426_vm9, %v1365_v50, %v1433_v30  ;;  %v330_v9 = vsel %vm268_vm1, %v248_v10, -inf  ;;  %v332_v12 = vsel %vm268_vm1, %v241_v7, -inf }
  0x55   : > { %v1477_v15 = vpack.c.b16 %v1434_v5, %v1427_v34  ;;  %v331_v35 = vmax.f32 %v329_v33, %v330_v9  ;;  %v333_v22 = vsel %vm268_vm1, %v249_v25, -inf  ;;  %v335_v19 = vsel %vm268_vm1, %v242_v24, -inf }
  0x56   : > { %v334_v36 = vmax.f32 %v332_v12, %v333_v22  ;;  %v336_v27 = vsel %vm268_vm1, %v250_v2, -inf  ;;  %v338_v37 = vsel %vm268_vm1, %v243_v31, -inf  ;;  %v339_v13 = vsel %vm268_vm1, %v251_v8, -inf }
  0x57   : > { %1745 = vmatprep.mubr.msk.bf16.mxu0 %vm268_vm1, %v1477_v15  ;;  %v337_v38 = vmax.f32 %v335_v19, %v336_v27  ;;  %v340_v39 = vmax.f32 %v338_v37, %v339_v13  ;;  %v389_v40 = vsel %vm268_vm1, %v319_v6, -inf  ;;  %v390_v41 = vsel %vm268_vm1, %v322_v17, -inf }
  0x58   : > { %v391_v42 = vmax.f32 %v389_v40, %v390_v41  ;;  %v392_v43 = vsel %vm268_vm1, %v325_v26, -inf  ;;  %v393_v44 = vsel %vm268_vm1, %v328_v32, -inf  ;;  %v395_v45 = vsel %vm268_vm1, %v331_v35, -inf }
  0x59   : > { %v394_v46 = vmax.f32 %v392_v43, %v393_v44  ;;  %v396_v47 = vsel %vm268_vm1, %v334_v36, -inf  ;;  %v398_v48 = vsel %vm268_vm1, %v337_v38, -inf  ;;  %v399_v61 = vsel %vm268_vm1, %v340_v39, -inf }
  0x5a   : > { %v397_v62 = vmax.f32 %v395_v45, %v396_v47  ;;  %v400_v6 = vmax.f32 %v398_v48, %v399_v61  ;;  %v565_v49 = vcombine.high %v391_v42, %v391_v42  ;;  %v572_v50 = vrot.slane %v391_v42, %v2005_v28 }
  0x5b   : > { %v582_v51 = vcombine.high %v394_v46, %v394_v46  ;;  %v589_v52 = vrot.slane %v394_v46, %v2005_v28  ;;  %v2180_v53 = vsel %vm268_vm1, %v220_v14, -inf  ;;  %v2183_v54 = vsel %vm268_vm1, %v228_v20, -inf }
  0x5c   : > { %v579_v55 = vrot.slane %v565_v49, %v2005_v28  ;;  %v580_v56 = vcombine.high %v572_v50, %v572_v50  ;;  %v599_v57 = vcombine.high %v397_v62, %v397_v62  ;;  %v2187_v58 = vrot.slane %v397_v62, %v2005_v28 }
  0x5d   : > { %v596_v59 = vrot.slane %v582_v51, %v2005_v28  ;;  %v597_v63 = vcombine.high %v589_v52, %v589_v52  ;;  %v616_v0 = vcombine.high %v400_v6, %v400_v6  ;;  %v2191_v1 = vrot.slane %v400_v6, %v2005_v28 }
  0x5e   : > { %v581_v17 = vcombine.high %v579_v55, %v579_v55  ;;  %v2194_v3 = vrot.slane %v599_v57, %v2005_v28  ;;  %v614_v23 = vcombine.high %v2187_v58, %v2187_v58  ;;  %v990_v4 = vsel %vm765_vm2, %v572_v50, -inf }
  0x5f   : > { %v598_v7 = vcombine.high %v596_v59, %v596_v59  ;;  %v2200_v10 = vrot.slane %v616_v0, %v2005_v28  ;;  %v631_v11 = vcombine.high %v2191_v1, %v2191_v1  ;;  %v991_v16 = vrot.slane %v990_v4, 4 }
  0x60   : > { %v615_v18 = vcombine.high %v2194_v3, %v2194_v3  ;;  %v997_v21 = vsel %vm765_vm2, %v580_v56, -inf  ;;  %v1004_v24 = vsel %vm765_vm2, %v579_v55, -inf  ;;  %v1011_v25 = vsel %vm765_vm2, %v581_v17, -inf }
  0x61   : > { %v632_v26 = vcombine.high %v2200_v10, %v2200_v10  ;;  %v992_v60 = vmax.f32 %v990_v4, %v991_v16  ;;  %v998_v29 = vrot.slane %v997_v21, 4  ;;  %v1005_v30 = vrot.slane %v1004_v24, 4 }
  0x62   : > { %v1012_v31 = vrot.slane %v1011_v25, 4  ;;  %v1018_v2 = vsel %vm765_vm2, %v589_v52, -inf  ;;  %v1025_v8 = vsel %vm765_vm2, %v597_v63, -inf  ;;  %v1032_v32 = vsel %vm765_vm2, %v596_v59, -inf }
  0x63   : > { %v993_v33 = vrot.slane %v992_v60, 2  ;;  %v999_v34 = vmax.f32 %v997_v21, %v998_v29  ;;  %v1006_v5 = vmax.f32 %v1004_v24, %v1005_v30  ;;  %v1019_v9 = vrot.slane %v1018_v2, 4 }
  0x64   : > { %v1013_v12 = vmax.f32 %v1011_v25, %v1012_v31  ;;  %v1026_v15 = vrot.slane %v1025_v8, 4  ;;  %v1033_v35 = vrot.slane %v1032_v32, 4  ;;  %v1039_v22 = vsel %vm765_vm2, %v598_v7, -inf }
  0x65   : > { %v994_v19 = vmax.f32 %v992_v60, %v993_v33  ;;  %v1000_v36 = vrot.slane %v999_v34, 2  ;;  %v1007_v27 = vrot.slane %v1006_v5, 2  ;;  %v1020_v37 = vmax.f32 %v1018_v2, %v1019_v9 }
  0x66   : > { %v1014_v13 = vrot.slane %v1013_v12, 2  ;;  %v1027_v38 = vmax.f32 %v1025_v8, %v1026_v15  ;;  %v1034_v39 = vmax.f32 %v1032_v32, %v1033_v35  ;;  %v1040_v40 = vrot.slane %v1039_v22, 4 }
  0x67   : > { %v995_v41 = vrot.slane %v994_v19, 1  ;;  %v1001_v42 = vmax.f32 %v999_v34, %v1000_v36  ;;  %v1008_v43 = vmax.f32 %v1006_v5, %v1007_v27  ;;  %v1021_v44 = vrot.slane %v1020_v37, 2 }
  0x68   : > { %v1015_v45 = vmax.f32 %v1013_v12, %v1014_v13  ;;  %v1028_v14 = vrot.slane %v1027_v38, 2  ;;  %v1035_v20 = vrot.slane %v1034_v39, 2  ;;  %v1041_v46 = vmax.f32 %v1039_v22, %v1040_v40 }
  0x69   : > { %v2215_v47 = vmax.f32 %v994_v19, %v995_v41  ;;  %v1002_v48 = vrot.slane %v1001_v42, 1  ;;  %v1009_v61 = vrot.slane %v1008_v43, 1  ;;  %v1022_v62 = vmax.f32 %v1020_v37, %v1021_v44 }
  0x6a   : > { %v1016_v6 = vrot.slane %v1015_v45, 1  ;;  %v1029_v49 = vmax.f32 %v1027_v38, %v1028_v14  ;;  %v1036_v50 = vmax.f32 %v1034_v39, %v1035_v20  ;;  %v1042_v51 = vrot.slane %v1041_v46, 2 }
  0x6b   : > { %v2217_v52 = vmax.f32 %v1001_v42, %v1002_v48  ;;  %v2219_v55 = vmax.f32 %v1008_v43, %v1009_v61  ;;  %v1023_v56 = vrot.slane %v1022_v62, 1  ;;  %v1046_v57 = vsel %vm765_vm2, %v2187_v58, -inf }
  0x6c   : > { %v2223_v59 = vmax.f32 %v1015_v45, %v1016_v6  ;;  %v1030_v63 = vrot.slane %v1029_v49, 1  ;;  %v1037_v0 = vrot.slane %v1036_v50, 1  ;;  %v1043_v17 = vmax.f32 %v1041_v46, %v1042_v51 }
  0x6d   : > { %v2225_v4 = vmax.f32 %v1022_v62, %v1023_v56  ;;  %v1047_v7 = vrot.slane %v1046_v57, 4  ;;  %v1053_v16 = vsel %vm765_vm2, %v614_v23, -inf  ;;  %v1060_v21 = vsel %vm765_vm2, %v2194_v3, -inf }
  0x6e   : > { %v2230_v24 = vmax.f32 %v1029_v49, %v1030_v63  ;;  %v2232_v25 = vmax.f32 %v1036_v50, %v1037_v0  ;;  %v1044_v60 = vrot.slane %v1043_v17, 1  ;;  %v1054_v29 = vrot.slane %v1053_v16, 4 }
  0x6f   : > { %v1048_v58 = vmax.f32 %v1046_v57, %v1047_v7  ;;  %v1061_v30 = vrot.slane %v1060_v21, 4  ;;  %v1067_v31 = vsel %vm765_vm2, %v615_v18, -inf  ;;  %v1074_v2 = vsel %vm765_vm2, %v2191_v1, -inf }
  0x70   : > { %v2237_v8 = vmax.f32 %v1043_v17, %v1044_v60  ;;  %v1055_v32 = vmax.f32 %v1053_v16, %v1054_v29  ;;  %v1068_v23 = vrot.slane %v1067_v31, 4  ;;  %v1075_v33 = vrot.slane %v1074_v2, 4 }
  0x71   : > { %v1049_v34 = vrot.slane %v1048_v58, 2  ;;  %v1062_v3 = vmax.f32 %v1060_v21, %v1061_v30  ;;  %v1081_v5 = vsel %vm765_vm2, %v631_v11, -inf  ;;  %v1088_v9 = vsel %vm765_vm2, %v2200_v10, -inf }
  0x72   : > { %v1056_v12 = vrot.slane %v1055_v32, 2  ;;  %v1069_v18 = vmax.f32 %v1067_v31, %v1068_v23  ;;  %v1076_v15 = vmax.f32 %v1074_v2, %v1075_v33  ;;  %v1082_v35 = vrot.slane %v1081_v5, 4 }
  0x73   : > { %v1050_v22 = vmax.f32 %v1048_v58, %v1049_v34  ;;  %v1063_v19 = vrot.slane %v1062_v3, 2  ;;  %v1089_v36 = vrot.slane %v1088_v9, 4  ;;  %v1095_v27 = vsel %vm765_vm2, %v632_v26, -inf }
  0x74   : > { %v1057_v37 = vmax.f32 %v1055_v32, %v1056_v12  ;;  %v1070_v13 = vrot.slane %v1069_v18, 2  ;;  %v1077_v1 = vrot.slane %v1076_v15, 2  ;;  %v1083_v38 = vmax.f32 %v1081_v5, %v1082_v35  ;;  %v221_v35 = vld [vmem:[%s1982_s5 + $0x88] sm:$0xff] }
  0x75   : > { %v1051_v11 = vrot.slane %v1050_v22, 1  ;;  %v1064_v39 = vmax.f32 %v1062_v3, %v1063_v19  ;;  %v1090_v40 = vmax.f32 %v1088_v9, %v1089_v36  ;;  %v1096_v41 = vrot.slane %v1095_v27, 4 }
  0x76   : > { %v1058_v42 = vrot.slane %v1057_v37, 1  ;;  %v1071_v43 = vmax.f32 %v1069_v18, %v1070_v13  ;;  %v1078_v44 = vmax.f32 %v1076_v15, %v1077_v1  ;;  %v1084_v45 = vrot.slane %v1083_v38, 2  ;;  %v229_v13 = vld [vmem:[%s1982_s5 + $0xc8] sm:$0xff] }
  0x77   : > { %v1052_v14 = vmax.f32 %v1050_v22, %v1051_v11  ;;  %v1065_v20 = vrot.slane %v1064_v39, 1  ;;  %v1091_v46 = vrot.slane %v1090_v40, 2  ;;  %v1097_v48 = vmax.f32 %v1095_v27, %v1096_v41 }
  0x78   : > { %v1059_v61 = vmax.f32 %v1057_v37, %v1058_v42  ;;  %v1072_v10 = vrot.slane %v1071_v43, 1  ;;  %v1079_v62 = vrot.slane %v1078_v44, 1  ;;  %v1085_v26 = vmax.f32 %v1083_v38, %v1084_v45  ;;  %v222_v37 = vld [vmem:[%s1982_s5 + $0x90] sm:$0xff] }
  0x79   : > { %v1066_v6 = vmax.f32 %v1064_v39, %v1065_v20  ;;  %v1092_v49 = vmax.f32 %v1090_v40, %v1091_v46  ;;  %v1098_v50 = vrot.slane %v1097_v48, 2  ;;  %v1246_v51 = vpack.c.bf16 %v2215_v47, %v2215_v47  ;;  %v230_v40 = vld [vmem:[%s1982_s5 + $0xd0] sm:$0xff]  ;;  %v224_v46 = vld [vmem:[%s1982_s5 + $0xa0] sm:$0xff] }
  0x7a   : > { %v1073_v56 = vmax.f32 %v1071_v43, %v1072_v10  ;;  %v1080_v57 = vmax.f32 %v1078_v44, %v1079_v62  ;;  %v1086_v63 = vrot.slane %v1085_v26, 1  ;;  %v1247_v0 = vpack.c.bf16 %v2217_v52, %v2217_v52  ;;  %v223_v43 = vld [vmem:[%s1982_s5 + $0x98] sm:$0xff] }
  0x7b   : > { %v1093_v17 = vrot.slane %v1092_v49, 1  ;;  %v1099_v7 = vmax.f32 %v1097_v48, %v1098_v50  ;;  %v1248_v16 = vpack.c.bf16 %v2219_v55, %v2219_v55  ;;  %v1249_v21 = vpack.c.bf16 %v2223_v59, %v2223_v59  ;;  %v231_v48 = vld [vmem:[%s1982_s5 + $0xd8] sm:$0xff] }
  0x7c   : > { %v1087_v60 = vmax.f32 %v1085_v26, %v1086_v63  ;;  %v1250_v29 = vpack.c.bf16 %v2225_v4, %v2225_v4  ;;  %v1251_v47 = vpack.c.bf16 %v2230_v24, %v2230_v24  ;;  %v1252_v58 = vpack.c.bf16 %v2232_v25, %v2232_v25 }
  0x7d   : > { %v1094_v30 = vmax.f32 %v1092_v49, %v1093_v17  ;;  %v1100_v52 = vrot.slane %v1099_v7, 1  ;;  %v1253_v31 = vpack.c.bf16 %v2237_v8, %v2237_v8  ;;  %v1254_v2 = vpack.c.bf16 %v1052_v14, %v1052_v14  ;;  %v226_v17 = vld [vmem:[%s1982_s5 + $0xb0] sm:$0xff] }
  0x7e   : > { %v1255_v55 = vpack.c.bf16 %v1059_v61, %v1059_v61  ;;  %v1256_v32 = vpack.c.bf16 %v1066_v6, %v1066_v6  ;;  %v1257_v59 = vpack.c.bf16 %v1073_v56, %v1073_v56  ;;  %v1258_v23 = vpack.c.bf16 %v1080_v57, %v1080_v57 }
  0x7f   : > { %v1101_v33 = vmax.f32 %v1099_v7, %v1100_v52  ;;  %v1259_v34 = vpack.c.bf16 %v1087_v60, %v1087_v60  ;;  %v1260_v4 = vpack.c.bf16 %v1094_v30, %v1094_v30  ;;  %v1382_v24 = vunpack.c.l.b16 %v1246_v51  ;;  %v225_v51 = vld [vmem:[%s1982_s5 + $0xa8] sm:$0xff]  ;;  %v235_v30 = vld [vmem:[%s1982_s5 + $0xf8] sm:$0xff] }
  0x80   : > { %v1383_v3 = vunpack.c.l.b16 %v1247_v0  ;;  %v1384_v5 = vunpack.c.l.b16 %v1248_v16  ;;  %v1385_v25 = vunpack.c.l.b16 %v1249_v21  ;;  %v1386_v9 = vunpack.c.l.b16 %v1250_v29  ;;  %v233_v7 = vld [vmem:[%s1982_s5 + $0xe8] sm:$0xff]  ;;  %v234_v16 = vld [vmem:[%s1982_s5 + $0xf0] sm:$0xff] }
  0x81   : > { %v1261_v12 = vpack.c.bf16 %v1101_v33, %v1101_v33  ;;  %v1387_v18 = vunpack.c.l.b16 %v1251_v47  ;;  %v1388_v8 = vunpack.c.l.b16 %v1252_v58  ;;  %v1389_v15 = vunpack.c.l.b16 %v1253_v31  ;;  %v227_v58 = vld [vmem:[%s1982_s5 + $0xb8] sm:$0xff] }
  0x82   : > { %v1390_v22 = vunpack.c.l.b16 %v1254_v2  ;;  %v1391_v19 = vunpack.c.l.b16 %v1255_v55  ;;  %v1392_v36 = vunpack.c.l.b16 %v1256_v32  ;;  %v1393_v27 = vunpack.c.l.b16 %v1257_v59 }
  0x83   : > { %v1394_v1 = vunpack.c.l.b16 %v1258_v23  ;;  %v1395_v38 = vunpack.c.l.b16 %v1259_v34  ;;  %v1396_v11 = vunpack.c.l.b16 %v1260_v4  ;;  %v1397_v39 = vunpack.c.l.b16 %v1261_v12 }
  0x84   : > { %v1449_v41 = vsel %vm1414_vm3, %v1383_v3, %v1382_v24  ;;  %v1456_v42 = vsel %vm1414_vm3, %v1391_v19, %v1390_v22  ;;  %v295_v44 = vmax.f32 %v2180_v53, %v2183_v54  ;;  %v296_v45 = vsel %vm268_vm1, %v221_v35, -inf  ;;  %v232_v53 = vld [vmem:[%s1982_s5 + $0xe0] sm:$0xff] }
  0x85   : > { %v1450_v14 = vsel %vm1416_vm4, %v1384_v5, %v1449_v41  ;;  %v1457_v20 = vsel %vm1416_vm4, %v1392_v36, %v1456_v42  ;;  %v297_v61 = vsel %vm268_vm1, %v229_v13, -inf  ;;  %v299_v10 = vsel %vm268_vm1, %v222_v37, -inf }
  0x86   : > { %v1451_v62 = vsel %vm1418_vm5, %v1385_v25, %v1450_v14  ;;  %v1458_v26 = vsel %vm1418_vm5, %v1393_v27, %v1457_v20  ;;  %v298_v54 = vmax.f32 %v296_v45, %v297_v61  ;;  %v300_v6 = vsel %vm268_vm1, %v230_v40, -inf }
  0x87   : > { %v1452_v49 = vsel %vm1420_vm6, %v1386_v9, %v1451_v62  ;;  %v1459_v50 = vsel %vm1420_vm6, %v1394_v1, %v1458_v26  ;;  %v301_v56 = vmax.f32 %v299_v10, %v300_v6  ;;  %v302_v57 = vsel %vm268_vm1, %v223_v43, -inf }
  0x88   : > { %v1453_v63 = vsel %vm1422_vm7, %v1387_v18, %v1452_v49  ;;  %v1460_v0 = vsel %vm1422_vm7, %v1395_v38, %v1459_v50  ;;  %v303_v21 = vsel %vm268_vm1, %v231_v48, -inf  ;;  %v305_v60 = vsel %vm268_vm1, %v224_v46, -inf }
  0x89   : > { %v1454_v29 = vsel %vm1424_vm8, %v1388_v8, %v1453_v63  ;;  %v1461_v47 = vsel %vm1424_vm8, %v1396_v11, %v1460_v0  ;;  %v304_v52 = vmax.f32 %v302_v57, %v303_v21  ;;  %v306_v31 = vsel %vm268_vm1, %v232_v53, -inf }
  0x8a   : > { %v1455_v2 = vsel %vm1426_vm9, %v1389_v15, %v1454_v29  ;;  %v1462_v55 = vsel %vm1426_vm9, %v1397_v39, %v1461_v47  ;;  %v307_v32 = vmax.f32 %v305_v60, %v306_v31  ;;  %v308_v59 = vsel %vm268_vm1, %v225_v51, -inf  ;;  %v252_v15 = vld [vmem:[%s1982_s5 + $0x180] sm:$0xff] }
  0x8b   : > { %v1479_v23 = vpack.c.b16 %v1462_v55, %v1455_v2  ;;  %v309_v33 = vsel %vm268_vm1, %v233_v7, -inf  ;;  %v311_v34 = vsel %vm268_vm1, %v226_v17, -inf  ;;  %v312_v4 = vsel %vm268_vm1, %v234_v16, -inf }
  0x8c   : > { %v310_v24 = vmax.f32 %v308_v59, %v309_v33  ;;  %v313_v3 = vmax.f32 %v311_v34, %v312_v4  ;;  %v314_v5 = vsel %vm268_vm1, %v227_v58, -inf  ;;  %v315_v25 = vsel %vm268_vm1, %v235_v30, -inf }
  0x8d   : > { %1749 = vmatprep.mubr.msk.bf16.mxu1 %vm268_vm1, %v1479_v23  ;;  %v316_v9 = vmax.f32 %v314_v5, %v315_v25  ;;  %v377_v12 = vsel %vm268_vm1, %v295_v44, -inf  ;;  %v378_v18 = vsel %vm268_vm1, %v298_v54, -inf  ;;  %v380_v8 = vsel %vm268_vm1, %v301_v56, -inf }
  0x8e   : > { %v379_v35 = vmax.f32 %v377_v12, %v378_v18  ;;  %v381_v22 = vsel %vm268_vm1, %v304_v52, -inf  ;;  %v383_v19 = vsel %vm268_vm1, %v307_v32, -inf  ;;  %v384_v36 = vsel %vm268_vm1, %v310_v24, -inf }
  0x8f   : > { %v382_v27 = vmax.f32 %v380_v8, %v381_v22  ;;  %v385_v37 = vmax.f32 %v383_v19, %v384_v36  ;;  %v386_v13 = vsel %vm268_vm1, %v313_v3, -inf  ;;  %v387_v1 = vsel %vm268_vm1, %v316_v9, -inf }
  0x90   : > { %v388_v38 = vmax.f32 %v386_v13, %v387_v1  ;;  %v497_v11 = vcombine.high %v379_v35, %v379_v35  ;;  %v504_v39 = vrot.slane %v379_v35, %v2005_v28  ;;  %v2321_v40 = vsel %vm268_vm1, %v252_v15, -inf }
  0x91   : > { %v514_v41 = vcombine.high %v382_v27, %v382_v27  ;;  %v521_v42 = vrot.slane %v382_v27, %v2005_v28  ;;  %v531_v43 = vcombine.high %v385_v37, %v385_v37  ;;  %v2325_v44 = vrot.slane %v385_v37, %v2005_v28 }
  0x92   : > { %v511_v45 = vrot.slane %v497_v11, %v2005_v28  ;;  %v512_v14 = vcombine.high %v504_v39, %v504_v39  ;;  %v548_v20 = vcombine.high %v388_v38, %v388_v38  ;;  %v2329_v46 = vrot.slane %v388_v38, %v2005_v28 }
  0x93   : > { %v528_v48 = vrot.slane %v514_v41, %v2005_v28  ;;  %v529_v61 = vcombine.high %v521_v42, %v521_v42  ;;  %v2333_v10 = vrot.slane %v531_v43, %v2005_v28  ;;  %v546_v62 = vcombine.high %v2325_v44, %v2325_v44 }
  0x94   : > { %v513_v26 = vcombine.high %v511_v45, %v511_v45  ;;  %v2338_v53 = vrot.slane %v548_v20, %v2005_v28  ;;  %v563_v54 = vcombine.high %v2329_v46, %v2329_v46  ;;  %v878_v6 = vsel %vm765_vm2, %v504_v39, -inf }
  0x95   : > { %v530_v49 = vcombine.high %v528_v48, %v528_v48  ;;  %v547_v50 = vcombine.high %v2333_v10, %v2333_v10  ;;  %v879_v51 = vrot.slane %v878_v6, 4  ;;  %v885_v56 = vsel %vm765_vm2, %v512_v14, -inf }
  0x96   : > { %v564_v57 = vcombine.high %v2338_v53, %v2338_v53  ;;  %v886_v63 = vrot.slane %v885_v56, 4  ;;  %v892_v0 = vsel %vm765_vm2, %v511_v45, -inf  ;;  %v899_v17 = vsel %vm765_vm2, %v513_v26, -inf }
  0x97   : > { %v880_v7 = vmax.f32 %v878_v6, %v879_v51  ;;  %v893_v16 = vrot.slane %v892_v0, 4  ;;  %v900_v21 = vrot.slane %v899_v17, 4  ;;  %v906_v60 = vsel %vm765_vm2, %v521_v42, -inf }
  0x98   : > { %v887_v29 = vmax.f32 %v885_v56, %v886_v63  ;;  %v907_v47 = vrot.slane %v906_v60, 4  ;;  %v913_v58 = vsel %vm765_vm2, %v529_v61, -inf  ;;  %v920_v30 = vsel %vm765_vm2, %v528_v48, -inf }
  0x99   : > { %v881_v52 = vrot.slane %v880_v7, 2  ;;  %v894_v31 = vmax.f32 %v892_v0, %v893_v16  ;;  %v901_v2 = vmax.f32 %v899_v17, %v900_v21  ;;  %v914_v55 = vrot.slane %v913_v58, 4 }
  0x9a   : > { %v888_v32 = vrot.slane %v887_v29, 2  ;;  %v908_v59 = vmax.f32 %v906_v60, %v907_v47  ;;  %v921_v23 = vrot.slane %v920_v30, 4  ;;  %v927_v33 = vsel %vm765_vm2, %v530_v49, -inf }
  0x9b   : > { %v882_v34 = vmax.f32 %v880_v7, %v881_v52  ;;  %v895_v4 = vrot.slane %v894_v31, 2  ;;  %v902_v24 = vrot.slane %v901_v2, 2  ;;  %v915_v3 = vmax.f32 %v913_v58, %v914_v55 }
  0x9c   : > { %v889_v5 = vmax.f32 %v887_v29, %v888_v32  ;;  %v909_v25 = vrot.slane %v908_v59, 2  ;;  %v922_v9 = vmax.f32 %v920_v30, %v921_v23  ;;  %v928_v12 = vrot.slane %v927_v33, 4 }
  0x9d   : > { %v883_v18 = vrot.slane %v882_v34, 1  ;;  %v896_v8 = vmax.f32 %v894_v31, %v895_v4  ;;  %v903_v15 = vmax.f32 %v901_v2, %v902_v24  ;;  %v916_v35 = vrot.slane %v915_v3, 2 }
  0x9e   : > { %v890_v22 = vrot.slane %v889_v5, 1  ;;  %v910_v19 = vmax.f32 %v908_v59, %v909_v25  ;;  %v923_v36 = vrot.slane %v922_v9, 2  ;;  %v929_v27 = vmax.f32 %v927_v33, %v928_v12 }
  0x9f   : > { %v2354_v37 = vmax.f32 %v882_v34, %v883_v18  ;;  %v897_v13 = vrot.slane %v896_v8, 1  ;;  %v904_v1 = vrot.slane %v903_v15, 1  ;;  %v917_v38 = vmax.f32 %v915_v3, %v916_v35 }
  0xa0   : > { %v2356_v11 = vmax.f32 %v889_v5, %v890_v22  ;;  %v911_v39 = vrot.slane %v910_v19, 1  ;;  %v924_v41 = vmax.f32 %v922_v9, %v923_v36  ;;  %v930_v42 = vrot.slane %v929_v27, 2 }
  0xa1   : > { %v2358_v43 = vmax.f32 %v896_v8, %v897_v13  ;;  %v2360_v45 = vmax.f32 %v903_v15, %v904_v1  ;;  %v918_v14 = vrot.slane %v917_v38, 1  ;;  %v934_v20 = vsel %vm765_vm2, %v2325_v44, -inf }
  0xa2   : > { %v2364_v48 = vmax.f32 %v910_v19, %v911_v39  ;;  %v925_v61 = vrot.slane %v924_v41, 1  ;;  %v931_v26 = vmax.f32 %v929_v27, %v930_v42  ;;  %v935_v6 = vrot.slane %v934_v20, 4 }
  0xa3   : > { %v2366_v49 = vmax.f32 %v917_v38, %v918_v14  ;;  %v941_v51 = vsel %vm765_vm2, %v546_v62, -inf  ;;  %v948_v56 = vsel %vm765_vm2, %v2333_v10, -inf  ;;  %v955_v63 = vsel %vm765_vm2, %v547_v50, -inf }
  0xa4   : > { %v2372_v0 = vmax.f32 %v924_v41, %v925_v61  ;;  %v932_v17 = vrot.slane %v931_v26, 1  ;;  %v936_v7 = vmax.f32 %v934_v20, %v935_v6  ;;  %v942_v16 = vrot.slane %v941_v51, 4 }
  0xa5   : > { %v949_v44 = vrot.slane %v948_v56, 4  ;;  %v956_v21 = vrot.slane %v955_v63, 4  ;;  %v962_v60 = vsel %vm765_vm2, %v2329_v46, -inf  ;;  %v969_v62 = vsel %vm765_vm2, %v563_v54, -inf }
  0xa6   : > { %v2380_v29 = vmax.f32 %v931_v26, %v932_v17  ;;  %v937_v10 = vrot.slane %v936_v7, 2  ;;  %v943_v47 = vmax.f32 %v941_v51, %v942_v16  ;;  %v963_v50 = vrot.slane %v962_v60, 4 }
  0xa7   : > { %v950_v58 = vmax.f32 %v948_v56, %v949_v44  ;;  %v957_v30 = vmax.f32 %v955_v63, %v956_v21  ;;  %v970_v52 = vrot.slane %v969_v62, 4  ;;  %v976_v31 = vsel %vm765_vm2, %v2338_v53, -inf }
  0xa8   : > { %v938_v2 = vmax.f32 %v936_v7, %v937_v10  ;;  %v944_v55 = vrot.slane %v943_v47, 2  ;;  %v964_v32 = vmax.f32 %v962_v60, %v963_v50  ;;  %v977_v59 = vrot.slane %v976_v31, 4 }
  0xa9   : > { %v951_v23 = vrot.slane %v950_v58, 2  ;;  %v958_v33 = vrot.slane %v957_v30, 2  ;;  %v971_v46 = vmax.f32 %v969_v62, %v970_v52  ;;  %v983_v54 = vsel %vm765_vm2, %v564_v57, -inf }
  0xaa   : > { %v939_v34 = vrot.slane %v938_v2, 1  ;;  %v945_v4 = vmax.f32 %v943_v47, %v944_v55  ;;  %v965_v24 = vrot.slane %v964_v32, 2  ;;  %v978_v3 = vmax.f32 %v976_v31, %v977_v59  ;;  %v260_v59 = vld [vmem:[%s1982_s5 + $0x1c0] sm:$0xff] }
  0xab   : > { %v952_v5 = vmax.f32 %v950_v58, %v951_v23  ;;  %v959_v25 = vmax.f32 %v957_v30, %v958_v33  ;;  %v972_v9 = vrot.slane %v971_v46, 2  ;;  %v984_v12 = vrot.slane %v983_v54, 4 }
  0xac   : > { %v940_v18 = vmax.f32 %v938_v2, %v939_v34  ;;  %v946_v8 = vrot.slane %v945_v4, 1  ;;  %v966_v15 = vmax.f32 %v964_v32, %v965_v24  ;;  %v979_v35 = vrot.slane %v978_v3, 2  ;;  %v253_v32 = vld [vmem:[%s1982_s5 + $0x188] sm:$0xff] }
  0xad   : > { %v953_v22 = vrot.slane %v952_v5, 1  ;;  %v960_v19 = vrot.slane %v959_v25, 1  ;;  %v973_v36 = vmax.f32 %v971_v46, %v972_v9  ;;  %v985_v27 = vmax.f32 %v983_v54, %v984_v12  ;;  %v261_v34 = vld [vmem:[%s1982_s5 + $0x1c8] sm:$0xff] }
  0xae   : > { %v947_v13 = vmax.f32 %v945_v4, %v946_v8  ;;  %v967_v53 = vrot.slane %v966_v15, 1  ;;  %v980_v1 = vmax.f32 %v978_v3, %v979_v35  ;;  %v1230_v57 = vpack.c.bf16 %v2354_v37, %v2354_v37  ;;  %v262_v8 = vld [vmem:[%s1982_s5 + $0x1d0] sm:$0xff] }
  0xaf   : > { %v954_v38 = vmax.f32 %v952_v5, %v953_v22  ;;  %v961_v39 = vmax.f32 %v959_v25, %v960_v19  ;;  %v974_v41 = vrot.slane %v973_v36, 1  ;;  %v986_v42 = vrot.slane %v985_v27, 2  ;;  %v254_v25 = vld [vmem:[%s1982_s5 + $0x190] sm:$0xff] }
  0xb0   : > { %v968_v14 = vmax.f32 %v966_v15, %v967_v53  ;;  %v981_v20 = vrot.slane %v980_v1, 1  ;;  %v1231_v61 = vpack.c.bf16 %v2356_v11, %v2356_v11  ;;  %v1232_v26 = vpack.c.bf16 %v2358_v43, %v2358_v43 }
  0xb1   : > { %v975_v6 = vmax.f32 %v973_v36, %v974_v41  ;;  %v987_v51 = vmax.f32 %v985_v27, %v986_v42  ;;  %v1233_v56 = vpack.c.bf16 %v2360_v45, %v2360_v45  ;;  %v1234_v37 = vpack.c.bf16 %v2364_v48, %v2364_v48  ;;  %v263_v36 = vld [vmem:[%s1982_s5 + $0x1d8] sm:$0xff] }
  0xb2   : > { %v982_v63 = vmax.f32 %v980_v1, %v981_v20  ;;  %v1235_v17 = vpack.c.bf16 %v2366_v49, %v2366_v49  ;;  %v1236_v7 = vpack.c.bf16 %v2372_v0, %v2372_v0  ;;  %v1237_v11 = vpack.c.bf16 %v2380_v29, %v2380_v29  ;;  %v265_v20 = vld [vmem:[%s1982_s5 + $0x1e8] sm:$0xff] }
  0xb3   : > { %v988_v16 = vrot.slane %v987_v51, 1  ;;  %v1238_v43 = vpack.c.bf16 %v940_v18, %v940_v18  ;;  %v1239_v44 = vpack.c.bf16 %v947_v13, %v947_v13  ;;  %v1240_v21 = vpack.c.bf16 %v954_v38, %v954_v38  ;;  %v255_v18 = vld [vmem:[%s1982_s5 + $0x198] sm:$0xff] }
  0xb4   : > { %v1241_v60 = vpack.c.bf16 %v961_v39, %v961_v39  ;;  %v1242_v45 = vpack.c.bf16 %v968_v14, %v968_v14  ;;  %v1243_v62 = vpack.c.bf16 %v975_v6, %v975_v6  ;;  %v1244_v48 = vpack.c.bf16 %v982_v63, %v982_v63  ;;  %v257_v14 = vld [vmem:[%s1982_s5 + $0x1a8] sm:$0xff] }
  0xb5   : > { %v989_v10 = vmax.f32 %v987_v51, %v988_v16  ;;  %v1366_v47 = vunpack.c.l.b16 %v1230_v57  ;;  %v1367_v50 = vunpack.c.l.b16 %v1231_v61  ;;  %v1368_v49 = vunpack.c.l.b16 %v1232_v26  ;;  %v256_v57 = vld [vmem:[%s1982_s5 + $0x1a0] sm:$0xff]  ;;  %v259_v16 = vld [vmem:[%s1982_s5 + $0x1b8] sm:$0xff] }
  0xb6   : > { %v1369_v58 = vunpack.c.l.b16 %v1233_v56  ;;  %v1370_v0 = vunpack.c.l.b16 %v1234_v37  ;;  %v1371_v30 = vunpack.c.l.b16 %v1235_v17  ;;  %v1372_v52 = vunpack.c.l.b16 %v1236_v7  ;;  %v258_v56 = vld [vmem:[%s1982_s5 + $0x1b0] sm:$0xff] }
  0xb7   : > { %v1245_v29 = vpack.c.bf16 %v989_v10, %v989_v10  ;;  %v1373_v31 = vunpack.c.l.b16 %v1237_v11  ;;  %v1374_v2 = vunpack.c.l.b16 %v1238_v43  ;;  %v1375_v55 = vunpack.c.l.b16 %v1239_v44  ;;  %v266_v37 = vld [vmem:[%s1982_s5 + $0x1f0] sm:$0xff]  ;;  %v267_v43 = vld [vmem:[%s1982_s5 + $0x1f8] sm:$0xff] }
  0xb8   : > { %v1376_v23 = vunpack.c.l.b16 %v1240_v21  ;;  %v1377_v33 = vunpack.c.l.b16 %v1241_v60  ;;  %v1378_v46 = vunpack.c.l.b16 %v1242_v45  ;;  %v1379_v54 = vunpack.c.l.b16 %v1243_v62 }
  0xb9   : > { %v1380_v4 = vunpack.c.l.b16 %v1244_v48  ;;  %v1381_v24 = vunpack.c.l.b16 %v1245_v29  ;;  %v1435_v3 = vsel %vm1414_vm3, %v1367_v50, %v1366_v47  ;;  %v1442_v5 = vsel %vm1414_vm3, %v1375_v55, %v1374_v2 }
  0xba   : > { %v1436_v9 = vsel %vm1416_vm4, %v1368_v49, %v1435_v3  ;;  %v1443_v12 = vsel %vm1416_vm4, %v1376_v23, %v1442_v5  ;;  %v342_v15 = vsel %vm268_vm1, %v260_v59, -inf  ;;  %v344_v35 = vsel %vm268_vm1, %v253_v32, -inf }
  0xbb   : > { %v1437_v22 = vsel %vm1418_vm5, %v1369_v58, %v1436_v9  ;;  %v1444_v19 = vsel %vm1418_vm5, %v1377_v33, %v1443_v12  ;;  %v343_v27 = vmax.f32 %v2321_v40, %v342_v15  ;;  %v345_v13 = vsel %vm268_vm1, %v261_v34, -inf  ;;  %v264_v40 = vld [vmem:[%s1982_s5 + $0x1e0] sm:$0xff] }
  0xbc   : > { %v1438_v53 = vsel %vm1420_vm6, %v1370_v0, %v1437_v22  ;;  %v1445_v1 = vsel %vm1420_vm6, %v1378_v46, %v1444_v19  ;;  %v346_v38 = vmax.f32 %v344_v35, %v345_v13  ;;  %v347_v39 = vsel %vm268_vm1, %v254_v25, -inf }
  0xbd   : > { %v1439_v41 = vsel %vm1422_vm7, %v1371_v30, %v1438_v53  ;;  %v1446_v42 = vsel %vm1422_vm7, %v1379_v54, %v1445_v1  ;;  %v348_v61 = vsel %vm268_vm1, %v262_v8, -inf  ;;  %v350_v26 = vsel %vm268_vm1, %v255_v18, -inf }
  0xbe   : > { %v1440_v6 = vsel %vm1424_vm8, %v1372_v52, %v1439_v41  ;;  %v1447_v51 = vsel %vm1424_vm8, %v1380_v4, %v1446_v42  ;;  %v349_v63 = vmax.f32 %v347_v39, %v348_v61  ;;  %v351_v17 = vsel %vm268_vm1, %v263_v36, -inf }
  0xbf   : > { %v1441_v7 = vsel %vm1426_vm9, %v1373_v31, %v1440_v6  ;;  %v1448_v11 = vsel %vm1426_vm9, %v1381_v24, %v1447_v51  ;;  %v352_v44 = vmax.f32 %v350_v26, %v351_v17  ;;  %v353_v21 = vsel %vm268_vm1, %v256_v57, -inf }
  0xc0   : > { %v1478_v60 = vpack.c.b16 %v1448_v11, %v1441_v7  ;;  %v354_v45 = vsel %vm268_vm1, %v264_v40, -inf  ;;  %v356_v62 = vsel %vm268_vm1, %v257_v14, -inf  ;;  %v357_v48 = vsel %vm268_vm1, %v265_v20, -inf }
  0xc1   : > { %v355_v10 = vmax.f32 %v353_v21, %v354_v45  ;;  %v358_v47 = vmax.f32 %v356_v62, %v357_v48  ;;  %v359_v50 = vsel %vm268_vm1, %v258_v56, -inf  ;;  %v360_v49 = vsel %vm268_vm1, %v266_v37, -inf }
  0xc2   : > { %1746 = vmatmul.mubr.msk.bf16.vlgmr.msra.gmra.mrb[0].mxu0 %vm268_vm1, %v1478_v60  ;;  %v361_v58 = vmax.f32 %v359_v50, %v360_v49  ;;  %v362_v0 = vsel %vm268_vm1, %v259_v16, -inf  ;;  %v363_v30 = vsel %vm268_vm1, %v267_v43, -inf  ;;  %v401_v52 = vsel %vm268_vm1, %v343_v27, -inf }
  0xc3   : > { %v364_v29 = vmax.f32 %v362_v0, %v363_v30  ;;  %v402_v31 = vsel %vm268_vm1, %v346_v38, -inf  ;;  %v404_v2 = vsel %vm268_vm1, %v349_v63, -inf  ;;  %v405_v55 = vsel %vm268_vm1, %v352_v44, -inf }
  0xc4   : > { %v403_v32 = vmax.f32 %v401_v52, %v402_v31  ;;  %v406_v59 = vmax.f32 %v404_v2, %v405_v55  ;;  %v407_v23 = vsel %vm268_vm1, %v355_v10, -inf  ;;  %v408_v33 = vsel %vm268_vm1, %v358_v47, -inf }
  0xc5   : > { %v409_v46 = vmax.f32 %v407_v23, %v408_v33  ;;  %v410_v54 = vsel %vm268_vm1, %v361_v58, -inf  ;;  %v411_v34 = vsel %vm268_vm1, %v364_v29, -inf }
  0xc6   : > { %v412_v4 = vmax.f32 %v410_v54, %v411_v34  ;;  %v633_v24 = vcombine.high %v403_v32, %v403_v32  ;;  %v640_v3 = vrot.slane %v403_v32, %v2005_v28  ;;  %v650_v5 = vcombine.high %v406_v59, %v406_v59 }
  0xc7   : > { %v657_v25 = vrot.slane %v406_v59, %v2005_v28  ;;  %v667_v9 = vcombine.high %v409_v46, %v409_v46  ;;  %v2461_v12 = vrot.slane %v409_v46, %v2005_v28 }
  0xc8   : > { %v647_v18 = vrot.slane %v633_v24, %v2005_v28  ;;  %v648_v8 = vcombine.high %v640_v3, %v640_v3  ;;  %v664_v15 = vrot.slane %v650_v5, %v2005_v28  ;;  %v684_v35 = vcombine.high %v412_v4, %v412_v4 }
  0xc9   : > { %v665_v22 = vcombine.high %v657_v25, %v657_v25  ;;  %v681_v36 = vrot.slane %v667_v9, %v2005_v28  ;;  %v682_v27 = vcombine.high %v2461_v12, %v2461_v12  ;;  %v1102_v13 = vsel %vm765_vm2, %v640_v3, -inf }
  0xca   : > { %v649_v19 = vcombine.high %v647_v18, %v647_v18  ;;  %v666_v53 = vcombine.high %v664_v15, %v664_v15  ;;  %v2470_v1 = vrot.slane %v412_v4, %v2005_v28  ;;  %v1103_v57 = vrot.slane %v1102_v13, 4 }
  0xcb   : > { %v1109_v38 = vsel %vm765_vm2, %v648_v8, -inf  ;;  %v2474_v39 = vrot.slane %v684_v35, %v2005_v28  ;;  %v1116_v42 = vsel %vm765_vm2, %v647_v18, -inf  ;;  %v1130_v26 = vsel %vm765_vm2, %v657_v25, -inf }
  0xcc   : > { %v1110_v41 = vrot.slane %v1109_v38, 4  ;;  %v1123_v14 = vsel %vm765_vm2, %v649_v19, -inf  ;;  %v1104_v40 = vmax.f32 %v1102_v13, %v1103_v57  ;;  %v1117_v20 = vrot.slane %v1116_v42, 4 }
  0xcd   : > { %v1124_v61 = vrot.slane %v1123_v14, 4  ;;  %v1131_v51 = vrot.slane %v1130_v26, 4  ;;  %v1137_v56 = vsel %vm765_vm2, %v665_v22, -inf  ;;  %v1144_v37 = vsel %vm765_vm2, %v664_v15, -inf }
  0xce   : > { %v1111_v6 = vmax.f32 %v1109_v38, %v1110_v41  ;;  %v1105_v63 = vrot.slane %v1104_v40, 2  ;;  %v1118_v17 = vmax.f32 %v1116_v42, %v1117_v20  ;;  %v1138_v7 = vrot.slane %v1137_v56, 4 }
  0xcf   : > { %v1125_v28 = vmax.f32 %v1123_v14, %v1124_v61  ;;  %v1132_v16 = vmax.f32 %v1130_v26, %v1131_v51  ;;  %v1145_v43 = vrot.slane %v1144_v37, 4  ;;  %v1151_v44 = vsel %vm765_vm2, %v666_v53, -inf }
  0xd0   : > { %v1112_v11 = vrot.slane %v1111_v6, 2  ;;  %v1106_v21 = vmax.f32 %v1104_v40, %v1105_v63  ;;  %v1119_v60 = vrot.slane %v1118_v17, 2  ;;  %v1139_v62 = vmax.f32 %v1137_v56, %v1138_v7 }
  0xd1   : > { %v1126_v45 = vrot.slane %v1125_v28, 2  ;;  %v1133_v10 = vrot.slane %v1132_v16, 2  ;;  %v1146_v47 = vmax.f32 %v1144_v37, %v1145_v43  ;;  %v1152_v50 = vrot.slane %v1151_v44, 4 }
  0xd2   : > { %v1113_v48 = vmax.f32 %v1111_v6, %v1112_v11  ;;  %v1107_v49 = vrot.slane %v1106_v21, 1  ;;  %v1120_v58 = vmax.f32 %v1118_v17, %v1119_v60  ;;  %v1140_v30 = vrot.slane %v1139_v62, 2 }
  0xd3   : > { %v1127_v0 = vmax.f32 %v1125_v28, %v1126_v45  ;;  %v1134_v29 = vmax.f32 %v1132_v16, %v1133_v10  ;;  %v1147_v31 = vrot.slane %v1146_v47, 2  ;;  %v1153_v2 = vmax.f32 %v1151_v44, %v1152_v50 }
  0xd4   : > { %v1114_v52 = vrot.slane %v1113_v48, 1  ;;  %v683_v55 = vcombine.high %v681_v36, %v681_v36  ;;  %v1121_v32 = vrot.slane %v1120_v58, 1  ;;  %v1141_v23 = vmax.f32 %v1139_v62, %v1140_v30 }
  0xd5   : > { %v1128_v59 = vrot.slane %v1127_v0, 1  ;;  %v699_v33 = vcombine.high %v2470_v1, %v2470_v1  ;;  %v1135_v46 = vrot.slane %v1134_v29, 1  ;;  %v1148_v54 = vmax.f32 %v1146_v47, %v1147_v31 }
  0xd6   : > { %v700_v34 = vcombine.high %v2474_v39, %v2474_v39  ;;  %v2486_v4 = vmax.f32 %v1106_v21, %v1107_v49  ;;  %v2488_v24 = vmax.f32 %v1113_v48, %v1114_v52  ;;  %v1158_v3 = vsel %vm765_vm2, %v2461_v12, -inf }
  0xd7   : > { %v2492_v5 = vmax.f32 %v1120_v58, %v1121_v32  ;;  %v2494_v25 = vmax.f32 %v1127_v0, %v1128_v59  ;;  %v1154_v9 = vrot.slane %v1153_v2, 2  ;;  %v1159_v18 = vrot.slane %v1158_v3, 4 }
  0xd8   : > { %v1142_v8 = vrot.slane %v1141_v23, 1  ;;  %v1165_v15 = vsel %vm765_vm2, %v682_v27, -inf  ;;  %v1172_v35 = vsel %vm765_vm2, %v681_v36, -inf  ;;  %v1179_v22 = vsel %vm765_vm2, %v683_v55, -inf }
  0xd9   : > { %v2499_v19 = vmax.f32 %v1134_v29, %v1135_v46  ;;  %v1149_v13 = vrot.slane %v1148_v54, 1  ;;  %v1160_v53 = vmax.f32 %v1158_v3, %v1159_v18  ;;  %v1166_v57 = vrot.slane %v1165_v15, 4 }
  0xda   : > { %v1173_v38 = vrot.slane %v1172_v35, 4  ;;  %v1180_v12 = vrot.slane %v1179_v22, 4  ;;  %v1186_v41 = vsel %vm765_vm2, %v2470_v1, -inf  ;;  %v1193_v42 = vsel %vm765_vm2, %v699_v33, -inf }
  0xdb   : > { %v1155_v14 = vmax.f32 %v1153_v2, %v1154_v9  ;;  %v1161_v40 = vrot.slane %v1160_v53, 2  ;;  %v1167_v20 = vmax.f32 %v1165_v15, %v1166_v57  ;;  %v1187_v27 = vrot.slane %v1186_v41, 4 }
  0xdc   : > { %v1174_v61 = vmax.f32 %v1172_v35, %v1173_v38  ;;  %v1181_v36 = vmax.f32 %v1179_v22, %v1180_v12  ;;  %v1194_v26 = vrot.slane %v1193_v42, 4  ;;  %v1200_v6 = vsel %vm765_vm2, %v2474_v39, -inf }
  0xdd   : > { %v1162_v51 = vmax.f32 %v1160_v53, %v1161_v40  ;;  %v1168_v56 = vrot.slane %v1167_v20, 2  ;;  %v1188_v37 = vmax.f32 %v1186_v41, %v1187_v27  ;;  %v1201_v63 = vrot.slane %v1200_v6, 4 }
  0xde   : > { %v1175_v17 = vrot.slane %v1174_v61, 2  ;;  %v1182_v28 = vrot.slane %v1181_v36, 2  ;;  %v1195_v7 = vmax.f32 %v1193_v42, %v1194_v26  ;;  %v1207_v1 = vsel %vm765_vm2, %v700_v34, -inf }
  0xdf   : > { %v1163_v11 = vrot.slane %v1162_v51, 1  ;;  %v1169_v16 = vmax.f32 %v1167_v20, %v1168_v56  ;;  %v1189_v43 = vrot.slane %v1188_v37, 2  ;;  %v1202_v44 = vmax.f32 %v1200_v6, %v1201_v63 }
  0xe0   : > { %v1176_v21 = vmax.f32 %v1174_v61, %v1175_v17  ;;  %v1183_v60 = vmax.f32 %v1181_v36, %v1182_v28  ;;  %v1196_v45 = vrot.slane %v1195_v7, 2  ;;  %v1208_v62 = vrot.slane %v1207_v1, 4 }
  0xe1   : > { %v1143_v48 = vmax.f32 %v1141_v23, %v1142_v8  ;;  %v1170_v10 = vrot.slane %v1169_v16, 1  ;;  %v1190_v39 = vmax.f32 %v1188_v37, %v1189_v43  ;;  %v1203_v47 = vrot.slane %v1202_v44, 2 }
  0xe2   : > { %v1177_v50 = vrot.slane %v1176_v21, 1  ;;  %v1184_v49 = vrot.slane %v1183_v60, 1  ;;  %v1197_v58 = vmax.f32 %v1195_v7, %v1196_v45  ;;  %v1209_v0 = vmax.f32 %v1207_v1, %v1208_v62 }
  0xe3   : > { %v1150_v30 = vmax.f32 %v1148_v54, %v1149_v13  ;;  %v1156_v52 = vrot.slane %v1155_v14, 1  ;;  %v1191_v29 = vrot.slane %v1190_v39, 1  ;;  %v1204_v31 = vmax.f32 %v1202_v44, %v1203_v47 }
  0xe4   : > { %v1164_v2 = vmax.f32 %v1162_v51, %v1163_v11  ;;  %v1171_v55 = vmax.f32 %v1169_v16, %v1170_v10  ;;  %v1198_v32 = vrot.slane %v1197_v58, 1  ;;  %v1210_v59 = vrot.slane %v1209_v0, 2 }
  0xe5   : > { %v1178_v33 = vmax.f32 %v1176_v21, %v1177_v50  ;;  %v1185_v46 = vmax.f32 %v1183_v60, %v1184_v49  ;;  %v1192_v34 = vmax.f32 %v1190_v39, %v1191_v29  ;;  %v1205_v3 = vrot.slane %v1204_v31, 1 }
  0xe6   : > { %v1199_v23 = vmax.f32 %v1197_v58, %v1198_v32  ;;  %v1211_v9 = vmax.f32 %v1209_v0, %v1210_v59  ;;  %v1262_v18 = vpack.c.bf16 %v2486_v4, %v2486_v4  ;;  %v1263_v8 = vpack.c.bf16 %v2488_v24, %v2488_v24 }
  0xe7   : > { %v1157_v54 = vmax.f32 %v1155_v14, %v1156_v52  ;;  %v1206_v15 = vmax.f32 %v1204_v31, %v1205_v3  ;;  %v1264_v35 = vpack.c.bf16 %v2492_v5, %v2492_v5  ;;  %v1265_v22 = vpack.c.bf16 %v2494_v25, %v2494_v25  ;;  %v1726_v52 = vld [vmem:[%s2631_s2] ss:$0 sm:$0xff] }
  0xe8   : > { %v1212_v13 = vrot.slane %v1211_v9, 1  ;;  %v1266_v53 = vpack.c.bf16 %v2499_v19, %v2499_v19  ;;  %v1270_v57 = vpack.c.bf16 %v1164_v2, %v1164_v2  ;;  %v1271_v38 = vpack.c.bf16 %v1171_v55, %v1171_v55 }
  0xe9   : > { %v1267_v12 = vpack.c.bf16 %v1143_v48, %v1143_v48  ;;  %v1272_v41 = vpack.c.bf16 %v1178_v33, %v1178_v33  ;;  %v1273_v4 = vpack.c.bf16 %v1185_v46, %v1185_v46  ;;  %v1274_v42 = vpack.c.bf16 %v1192_v34, %v1192_v34 }
  0xea   : > { %v1213_v40 = vmax.f32 %v1211_v9, %v1212_v13  ;;  %v1275_v24 = vpack.c.bf16 %v1199_v23, %v1199_v23  ;;  %v1398_v14 = vunpack.c.l.b16 %v1262_v18  ;;  %v1399_v20 = vunpack.c.l.b16 %v1263_v8 }
  0xeb   : > { %v1268_v27 = vpack.c.bf16 %v1150_v30, %v1150_v30  ;;  %v1269_v61 = vpack.c.bf16 %v1157_v54, %v1157_v54  ;;  %v1276_v5 = vpack.c.bf16 %v1206_v15, %v1206_v15  ;;  %v1400_v36 = vunpack.c.l.b16 %v1264_v35 }
  0xec   : > { %v1277_v26 = vpack.c.bf16 %v1213_v40, %v1213_v40  ;;  %v1401_v25 = vunpack.c.l.b16 %v1265_v22  ;;  %v1406_v6 = vunpack.c.l.b16 %v1270_v57  ;;  %v1407_v51 = vunpack.c.l.b16 %v1271_v38 }
  0xed   : > { %v1402_v56 = vunpack.c.l.b16 %v1266_v53  ;;  %v1408_v19 = vunpack.c.l.b16 %v1272_v41  ;;  %v1409_v37 = vunpack.c.l.b16 %v1273_v4  ;;  %v1410_v63 = vunpack.c.l.b16 %v1274_v42 }
  0xee   : > { %v1403_v17 = vunpack.c.l.b16 %v1267_v12  ;;  %v1411_v28 = vunpack.c.l.b16 %v1275_v24  ;;  %v1463_v7 = vsel %vm1414_vm3, %v1399_v20, %v1398_v14  ;;  %v1470_v1 = vsel %vm1414_vm3, %v1407_v51, %v1406_v6 }
  0xef   : > { %v1404_v11 = vunpack.c.l.b16 %v1268_v27  ;;  %v1412_v16 = vunpack.c.l.b16 %v1276_v5  ;;  %v1464_v43 = vsel %vm1416_vm4, %v1400_v36, %v1463_v7  ;;  %v1471_v44 = vsel %vm1416_vm4, %v1408_v19, %v1470_v1 }
  0xf0   : > { %v1405_v21 = vunpack.c.l.b16 %v1269_v61  ;;  %v1413_v60 = vunpack.c.l.b16 %v1277_v26  ;;  %v1465_v45 = vsel %vm1418_vm5, %v1401_v25, %v1464_v43  ;;  %v1472_v62 = vsel %vm1418_vm5, %v1409_v37, %v1471_v44 }
  0xf1   : > { %v1466_v48 = vsel %vm1420_vm6, %v1402_v56, %v1465_v45  ;;  %v1473_v10 = vsel %vm1420_vm6, %v1410_v63, %v1472_v62 }
  0xf2   : > { %v1467_v39 = vsel %vm1422_vm7, %v1403_v17, %v1466_v48  ;;  %v1474_v47 = vsel %vm1422_vm7, %v1411_v28, %v1473_v10 }
  0xf3   : > { %v1468_v50 = vsel %vm1424_vm8, %v1404_v11, %v1467_v39  ;;  %v1475_v49 = vsel %vm1424_vm8, %v1412_v16, %v1474_v47 }
  0xf4   : > { %v1469_v58 = vsel %vm1426_vm9, %v1405_v21, %v1468_v50  ;;  %v1476_v0 = vsel %vm1426_vm9, %v1413_v60, %v1475_v49 }
  0xf5   : > { %v1480_v30 = vpack.c.b16 %v1476_v0, %v1469_v58 }
  0xf7   : > { %1750 = vmatmul.mubr.msk.bf16.vlgmr.msra.gmra.mrb[0].mxu1 %vm268_vm1, %v1480_v30 }
 0x195   : > { %v1747_v29 = vpop.f32.mrb[0].mxu0 }
 0x196   : > { %v1540_v31 = vadd.f32 %v1747_v29, %v1726_v52  ;;  %v1531_v2 = vpop.f32.mrb[1].mxu0 }
 0x197   : > { %v1532_v55 = vadd.f32 %v1726_v52, %v1531_v2  ;;  %v1748_v32 = vpop.f32.mrb[2].mxu0 }
 0x198   : > { %v1572_v59 = vcombine.high %v1540_v31, %v1540_v31  ;;  %v1590_v33 = vpack.c.bf16 %v1540_v31, %v1540_v31  ;;  %v1543_v46 = vadd.f32 %v1748_v32, %v1726_v52  ;;  %v1534_v34 = vpop.f32.mrb[3].mxu0 }
 0x199   : > { %v1570_v3 = vcombine.high %v1532_v55, %v1532_v55  ;;  %v1586_v23 = vpack.c.bf16 %v1532_v55, %v1532_v55  ;;  %v1535_v9 = vadd.f32 %v1726_v52, %v1534_v34 }
 0x19a   : > { %v1591_v18 = vpack.c.bf16 %v1572_v59, %v1572_v59  ;;  %1607 = vst.msk [vmem:[%s2538_s10 + $0x8] sm:$0x3] %vm1602_vm10, %v1590_v33  ;;  %v1573_v8 = vcombine.high %v1543_v46, %v1543_v46  ;;  %v1592_v54 = vpack.c.bf16 %v1543_v46, %v1543_v46 }
 0x19b   : > { %v1587_v15 = vpack.c.bf16 %v1570_v3, %v1570_v3  ;;  %1603 = vst.msk [vmem:[%s2538_s10] sm:$0x3] %vm1602_vm10, %v1586_v23  ;;  %v1571_v35 = vcombine.high %v1535_v9, %v1535_v9  ;;  %v1588_v22 = vpack.c.bf16 %v1535_v9, %v1535_v9 }
 0x19c   : > { %1608 = vst.msk [vmem:[%s2538_s10 + $0xa] sm:$0x3] %vm1602_vm10, %v1591_v18  ;;  %v1593_v13 = vpack.c.bf16 %v1573_v8, %v1573_v8  ;;  %1609 = vst.msk [vmem:[%s2538_s10 + $0xc] sm:$0x3] %vm1602_vm10, %v1592_v54 }
 0x19d   : > { %1604 = vst.msk [vmem:[%s2538_s10 + $0x2] sm:$0x3] %vm1602_vm10, %v1587_v15  ;;  %v1589_v53 = vpack.c.bf16 %v1571_v35, %v1571_v35  ;;  %1605 = vst.msk [vmem:[%s2538_s10 + $0x4] sm:$0x3] %vm1602_vm10, %v1588_v22 }
 0x19e   : > { %1610 = vst.msk [vmem:[%s2538_s10 + $0xe] sm:$0x3] %vm1602_vm10, %v1593_v13 }
 0x19f   : > { %1606 = vst.msk [vmem:[%s2538_s10 + $0x6] sm:$0x3] %vm1602_vm10, %v1589_v53 }
 0x1ca   : > { %v1751_v57 = vpop.f32.mrb[0].mxu1 }
 0x1cb   : > { %v1556_v38 = vadd.f32 %v1751_v57, %v1726_v52  ;;  %v1547_v12 = vpop.f32.mrb[1].mxu1 }
 0x1cc   : > { %v1548_v41 = vadd.f32 %v1726_v52, %v1547_v12  ;;  %v1752_v4 = vpop.f32.mrb[2].mxu1 }
 0x1cd   : > { %v1576_v42 = vcombine.high %v1556_v38, %v1556_v38  ;;  %v1598_v40 = vpack.c.bf16 %v1556_v38, %v1556_v38  ;;  %v1559_v24 = vadd.f32 %v1752_v4, %v1726_v52  ;;  %v1550_v14 = vpop.f32.mrb[3].mxu1 }
 0x1ce   : > { %v1574_v20 = vcombine.high %v1548_v41, %v1548_v41  ;;  %v1594_v27 = vpack.c.bf16 %v1548_v41, %v1548_v41  ;;  %v1551_v61 = vadd.f32 %v1726_v52, %v1550_v14 }
 0x1cf   : > { %v1599_v5 = vpack.c.bf16 %v1576_v42, %v1576_v42  ;;  %1615 = vst.msk [vmem:[%s2538_s10 + $0x18] sm:$0x3] %vm1602_vm10, %v1598_v40  ;;  %v1577_v36 = vcombine.high %v1559_v24, %v1559_v24  ;;  %v1600_v26 = vpack.c.bf16 %v1559_v24, %v1559_v24 }
 0x1d0   : > { %v1595_v25 = vpack.c.bf16 %v1574_v20, %v1574_v20  ;;  %1611 = vst.msk [vmem:[%s2538_s10 + $0x10] sm:$0x3] %vm1602_vm10, %v1594_v27  ;;  %v1575_v6 = vcombine.high %v1551_v61, %v1551_v61  ;;  %v1596_v51 = vpack.c.bf16 %v1551_v61, %v1551_v61 }
 0x1d1   : > { %1616 = vst.msk [vmem:[%s2538_s10 + $0x1a] sm:$0x3] %vm1602_vm10, %v1599_v5  ;;  %v1601_v56 = vpack.c.bf16 %v1577_v36, %v1577_v36  ;;  %1617 = vst.msk [vmem:[%s2538_s10 + $0x1c] sm:$0x3] %vm1602_vm10, %v1600_v26 }
 0x1d2   : > { %1612 = vst.msk [vmem:[%s2538_s10 + $0x12] sm:$0x3] %vm1602_vm10, %v1595_v25  ;;  %v1597_v19 = vpack.c.bf16 %v1575_v6, %v1575_v6  ;;  %1613 = vst.msk [vmem:[%s2538_s10 + $0x14] sm:$0x3] %vm1602_vm10, %v1596_v51 }
 0x1d3   : > { %1618 = vst.msk [vmem:[%s2538_s10 + $0x1e] sm:$0x3] %vm1602_vm10, %v1601_v56 }
 0x1d4   : > { %1614 = vst.msk [vmem:[%s2538_s10 + $0x16] sm:$0x3] %vm1602_vm10, %v1597_v19 }
 0x1d5   : > { %1828 = shalt.err (!%p1825_p5)
}
 0x1d6   : > { %s1829_s30 = scalar_lea.hbm %s2569_s21, 512  ;;  %s1833_s6 = scalar_lea.hbm %s2632_s3, 1024 }
 0x1d7   : > { %p1830_p6 = scmp.ne.s32.totalorder %s2569_s21, %s1829_s30  ;;  %p1834_p10 = scmp.lt.u32.totalorder %s2569_s21, %s2632_s3 }
 0x1d8   : > { %p1835_p11 = scmp.lt.u32.totalorder %s1833_s6, %s1829_s30  ;;  %p1837_p13 = scmp.lt.u32.totalorder %s1829_s30, %s2569_s21 }
 0x1d9   : > { %p1831_p7 = pnand %p1830_p6, %p1959_p4 }
 0x1da   : > { %p1836_p12 = por %p1835_p11, %p1834_p10 }
 0x1db   : > { %p1832_p9 = pneg %p1831_p7 }
 0x1dc   : > { %p1838_p0 = por %p1837_p13, %p1836_p12 }
 0x1de   : > { %p1839_p1 = pnand %p1838_p0, %p1832_p9 }
 0x1e0   : > { %1842 = shalt.err (!%p1839_p1)
}
 0x1e1   : > { %s1897_s9 = smov 32   ;;  %s1898_s10 = smov 2  }
 0x1e2   : > { %1757 = dma.vmem_to_hbm [thread:$0]  (%p1959_p4), %s2571_s18, 512, %s2569_s21, %s2583_s23, %s1897_s9, %s1897_s9, %s1898_s10  }
 0x1e3 PF: > { %p1763_p2 = scmp.ge.s32.totalorder %s1893_s17, 2  ;;  %s1651_s11 = sand.u32 1, %s1873_s12  }
 0x1e4   : > { %s1652_s15 = scalar_lea.sflag [#allocation3], %s1651_s11 }
 0x1e5   : > { %p1760_p3 = pnand %p1763_p2, %p1966_p8 }
 0x1e7   : > { %1868 = dma.done.wait (!%p1760_p3), %s1652_s15, 512  }
 0x1e8   : > { %1870 = vsyncadd (!%p1760_p3), %s1652_s15, 4294966784  ;;  %s16_s17 = sadd.s32 1, %s1893_s17   ;;  %s2635_s12 = smov %s1877_s13 }
 0x1e9   : > { %p13_p5 = scmp.ge.s32.totalorder %s16_s17, 4   ;;  %s2636_s13 = smov %s1881_s14 }
 0x1ea   : > { %s2637_s14 = smov %s1972_s25  ;;  %s2638_s15 = smov %s1889_s16 }
 0x1eb   : > { %s2639_s16 = smov %s2641_s20  ;;  %15 = sbr.rel (!%p13_p5) target bundleno = 4 (0x4), region = 67 }
 0x1f2   :  { %1657 = vsyncpa [#allocation3], 1 }
 0x1f3   :  { %1659 = vsyncpa [#allocation3 + $0x1], 1 }

</bundles_post_ra>
